<compile_context>
chip_gen: v5e
topology: v5e:2x2
jax: 0.10.0
libtpu: 0.0.40
codegen_flags: <defaults>
</compile_context>

<pallas_src>
import functools

import jax
import jax.numpy as jnp
from jax import lax
from jax.experimental import pallas as pl
from jax.experimental.pallas import tpu as pltpu

IN_FEATURES = 1000     # dinov2_vitl14_lc output dim
HIDDEN = 384
NUM_CLASSES = 1
LN_EPS = 1e-5          # nn.LayerNorm default
LANE = 128
SUBLANE = 8


def _round_up(x, m):
    return ((x + m - 1) // m) * m


def _hidden_block(x_ref, w1_ref, p_ref):
    """Linear(1000->384) [bf16 MXU, f32 acc] + LayerNorm(384) + ReLU (f32 math).

    p_ref rows: 0 = b1, 1 = gamma, 2 = beta (extra rows, if any, are unused here).
    """
    # x_ref: (TB, Fp) bf16   w1_ref: (Fp, H) bf16   p_ref: (>=3, H) f32
    h = jnp.dot(x_ref[...], w1_ref[...], preferred_element_type=jnp.float32)
    h = h + p_ref[0:1, :]                                   # bias b1
    mean = jnp.mean(h, axis=-1, keepdims=True)
    c = h - mean
    var = jnp.mean(c * c, axis=-1, keepdims=True)
    h = c * lax.rsqrt(var + LN_EPS)                          # EUP rsqrt
    h = h * p_ref[1:2, :] + p_ref[2:3, :]                    # LN affine
    # Dropout(p=0.1): identity at inference time (model.eval()).
    return jnp.maximum(h, 0.0)


def fc_head_kernel_c1(x_ref, w1_ref, p_ref, b2_ref, o_ref):
    # num_classes == 1: second Linear as lane-wise multiply + cross-lane sum
    # (VPU/XLU) instead of an N=1 MXU pass.  Row 3 of the parameter block is
    # the W2 row vector.  Result broadcast across the 128-lane output slab
    # (lane-dense unmasked store); column 0 is sliced outside.
    h = _hidden_block(x_ref, w1_ref, p_ref)                  # (TB, H) f32
    col = jnp.sum(h * p_ref[3:4, :], axis=-1, keepdims=True)  # (TB, 1)
    o_ref[...] = (col + b2_ref[...]).astype(o_ref.dtype)      # (TB, Cp)


def fc_head_kernel_matmul(x_ref, w1_ref, p_ref, w2_ref, b2_ref, o_ref):
    # General num_classes path: MXU matmul against a lane-padded W2.
    h = _hidden_block(x_ref, w1_ref, p_ref)
    o_ref[...] = (jnp.dot(h, w2_ref[...], preferred_element_type=jnp.float32)
                  + b2_ref[...]).astype(o_ref.dtype)


@functools.partial(jax.jit, static_argnames=("tile_b",))
def convnext_fc_head(feats, w1, b1, gamma, beta, w2, b2, *, tile_b=None):
    B, F = feats.shape
    Fh, H = w1.shape
    C = w2.shape[1]
    assert F == Fh

    # ---- batch tile selection ------------------------------------------------
    if tile_b is None:
        if B <= SUBLANE:
            tile_b = _round_up(B, SUBLANE)                 # whole batch, one tile
        else:
            # >=2 grid steps (keeps both v7x TensorCores busy), rows per tile
            # capped at 512 (large tiles amortise per-step pipeline overhead).
            tile_b = min(512, _round_up(B, 2 * SUBLANE) // 2)
            tile_b = _round_up(tile_b, SUBLANE)
    B_pad = _round_up(max(B, tile_b), tile_b)

    # ---- lane / dtype padding ------------------------------------------------
    Fp = _round_up(F, LANE)                                # 1000 -> 1024
    Cp = _round_up(C, LANE)                                # lane-dense output slab

    # Single fused XLA pad+cast pass; kernel then streams bf16 tiles (half the
    # feature DMA bytes of f32).
    x = jnp.pad(feats, ((0, B_pad - B), (0, Fp - F))).astype(jnp.bfloat16)
    w1p = jnp.pad(w1, ((0, Fp - F), (0, 0))).astype(jnp.bfloat16)

    b2p = jnp.pad(b2.reshape(1, C), ((0, 0), (0, Cp - C))).astype(jnp.float32)

    if C == 1:
        kernel = fc_head_kernel_c1
        # Pack b1 / gamma / beta / w2-row into one resident parameter block.
        params = jnp.concatenate(
            [b1.reshape(1, H), gamma.reshape(1, H), beta.reshape(1, H),
             w2.reshape(1, H)], axis=0).astype(jnp.float32)
        p_rows = 4
        extra_specs = []
        extra_args = []
    else:
        kernel = fc_head_kernel_matmul
        params = jnp.concatenate(
            [b1.reshape(1, H), gamma.reshape(1, H), beta.reshape(1, H)],
            axis=0).astype(jnp.float32)
        p_rows = 3
        w2p = jnp.pad(w2, ((0, 0), (0, Cp - C))).astype(jnp.float32)
        extra_specs = [pl.BlockSpec((H, Cp), lambda i: (0, 0))]   # W2 (resident)
        extra_args = [w2p]

    grid = (B_pad // tile_b,)
    out = pl.pallas_call(
        kernel,
        out_shape=jax.ShapeDtypeStruct((B_pad, Cp), jnp.float32),
        grid_spec=pltpu.PrefetchScalarGridSpec(
            num_scalar_prefetch=0,
            grid=grid,
            in_specs=[
                pl.BlockSpec((tile_b, Fp), lambda i: (i, 0)),   # feature tile (bf16)
                pl.BlockSpec((Fp, H), lambda i: (0, 0)),        # W1 (bf16, resident)
                pl.BlockSpec((p_rows, H), lambda i: (0, 0)),    # packed LN/bias params
                *extra_specs,                                   # padded W2 (C>1 only)
                pl.BlockSpec((1, Cp), lambda i: (0, 0)),        # b2 (lane-padded)
            ],
            out_specs=pl.BlockSpec((tile_b, Cp), lambda i: (i, 0)),
        ),
        compiler_params=pltpu.CompilerParams(
            dimension_semantics=("parallel",),
        ),
    )(x, w1p, params, *extra_args, b2p)

    return out[:B, :C]


def init_params(key):
    """Matches the PyTorch __init__: xavier_uniform_ for weight matrices
    (dim > 1), PyTorch-default uniform for Linear biases, ones/zeros for the
    LayerNorm affine params."""
    k1, k2, k3, k4 = jax.random.split(key, 4)

    def xavier_uniform(k, fan_in, fan_out):
        limit = jnp.sqrt(6.0 / (fan_in + fan_out))
        return jax.random.uniform(k, (fan_in, fan_out), jnp.float32, -limit, limit)

    def linear_bias(k, fan_in, n):
        bound = 1.0 / jnp.sqrt(fan_in)
        return jax.random.uniform(k, (1, n), jnp.float32, -bound, bound)

    w1 = xavier_uniform(k1, IN_FEATURES, HIDDEN)
    b1 = linear_bias(k2, IN_FEATURES, HIDDEN)
    gamma = jnp.ones((1, HIDDEN), jnp.float32)
    beta = jnp.zeros((1, HIDDEN), jnp.float32)
    w2 = xavier_uniform(k3, HIDDEN, NUM_CLASSES)
    b2 = linear_bias(k4, HIDDEN, NUM_CLASSES)
    return w1, b1, gamma, beta, w2, b2


def reference_fc_head(feats, w1, b1, gamma, beta, w2, b2):
    # Reference applies the same bf16 rounding to the first matmul operands as
    # the kernel (f32 accumulation), so the comparison is apples-to-apples.
    x = feats.astype(jnp.bfloat16).astype(jnp.float32)
    w1f = w1.astype(jnp.bfloat16).astype(jnp.float32)
    h = jnp.dot(x, w1f, precision=lax.Precision.HIGHEST) + b1
    mean = jnp.mean(h, axis=-1, keepdims=True)
    var = jnp.mean((h - mean) ** 2, axis=-1, keepdims=True)
    h = (h - mean) / jnp.sqrt(var + LN_EPS)
    h = h * gamma + beta
    h = jnp.maximum(h, 0.0)
    return h @ w2 + b2


if __name__ == "__main__":
    key = jax.random.PRNGKey(0)
    kx, kp = jax.random.split(key)

    B = 32  # small demo batch
    # Backbone (dinov2_vitl14_lc) output features, shape (B, 1000).
    feats = jax.random.normal(kx, (B, IN_FEATURES), jnp.float32)

    params = init_params(kp)

    out = convnext_fc_head(feats, *params)
    out = jax.block_until_ready(out)

    ref = reference_fc_head(feats, *params)
    assert out.shape == (B, NUM_CLASSES)
    assert jnp.allclose(out, ref, atol=1e-2, rtol=1e-2), (out, ref)

    print("KERNEL_OK")
</pallas_src>

<mosaic_0001>
module attributes {stable_mosaic.version = 11 : i64} {
  func.func @fc_head_kernel_c1(%arg0: i32, %arg1: memref<16x1024xbf16, #tpu.memory_space<vmem>>, %arg2: memref<1024x384xbf16, #tpu.memory_space<vmem>>, %arg3: memref<4x384xf32, #tpu.memory_space<vmem>>, %arg4: memref<1x128xf32, #tpu.memory_space<vmem>>, %arg5: memref<16x128xf32, #tpu.memory_space<vmem>>) attributes {dimension_semantics = [#tpu.dimension_semantics<parallel>], iteration_bounds = array<i64: 2>, scalar_prefetch = 0 : i64, scratch_operands = 0 : i64, tpu.core_type = #tpu.core_type<tc>, window_params = [{transform_indices = @transform_0, window_bounds = array<i64: 16, 1024>}, {pipeline_mode = #tpu.pipeline_mode<synchronous>, transform_indices = @transform_1, window_bounds = array<i64: 1024, 384>}, {pipeline_mode = #tpu.pipeline_mode<synchronous>, transform_indices = @transform_2, window_bounds = array<i64: 4, 384>}, {pipeline_mode = #tpu.pipeline_mode<synchronous>, transform_indices = @transform_3, window_bounds = array<i64: 1, 128>}, {transform_indices = @transform_4, window_bounds = array<i64: 16, 128>}]} {
    %c0 = arith.constant 0 : index
    %c0_0 = arith.constant 0 : index
    %0 = vector.load %arg1[%c0, %c0_0] : memref<16x1024xbf16, #tpu.memory_space<vmem>>, vector<16x1024xbf16>
    %c0_1 = arith.constant 0 : index
    %c0_2 = arith.constant 0 : index
    %1 = vector.load %arg2[%c0_1, %c0_2] : memref<1024x384xbf16, #tpu.memory_space<vmem>>, vector<1024x384xbf16>
    %cst = arith.constant dense<0.000000e+00> : vector<16x384xf32>
    %2 = tpu.matmul %0, %1, %cst {dimension_numbers = #tpu.dot_dimension_numbers<[1], [0], [0], [1], [0, 0, 1, 1], [], []>} : vector<16x1024xbf16>, vector<1024x384xbf16>, vector<16x384xf32> -> vector<16x384xf32>
    %c0_3 = arith.constant 0 : index
    %c0_4 = arith.constant 0 : index
    %3 = vector.load %arg3[%c0_3, %c0_4] : memref<4x384xf32, #tpu.memory_space<vmem>>, vector<1x384xf32>
    %4 = vector.broadcast %3 : vector<1x384xf32> to vector<16x384xf32>
    %5 = arith.addf %2, %4 : vector<16x384xf32>
    %cst_5 = arith.constant dense<0.000000e+00> : vector<16xf32>
    %6 = vector.multi_reduction <add>, %5, %cst_5 [1] : vector<16x384xf32> to vector<16xf32>
    %7 = vector.shape_cast %6 : vector<16xf32> to vector<16x1xf32>
    %cst_6 = arith.constant 3.840000e+02 : f32
    %8 = vector.broadcast %cst_6 : f32 to vector<16x1xf32>
    %9 = arith.divf %7, %8 : vector<16x1xf32>
    %10 = vector.broadcast %9 : vector<16x1xf32> to vector<16x384xf32>
    %11 = arith.subf %5, %10 : vector<16x384xf32>
    %12 = arith.mulf %11, %11 : vector<16x384xf32>
    %cst_7 = arith.constant dense<0.000000e+00> : vector<16xf32>
    %13 = vector.multi_reduction <add>, %12, %cst_7 [1] : vector<16x384xf32> to vector<16xf32>
    %14 = vector.shape_cast %13 : vector<16xf32> to vector<16x1xf32>
    %cst_8 = arith.constant 3.840000e+02 : f32
    %15 = vector.broadcast %cst_8 : f32 to vector<16x1xf32>
    %16 = arith.divf %14, %15 : vector<16x1xf32>
    %cst_9 = arith.constant 9.99999974E-6 : f32
    %17 = vector.broadcast %cst_9 : f32 to vector<16x1xf32>
    %18 = arith.addf %16, %17 : vector<16x1xf32>
    %19 = math.rsqrt %18 : vector<16x1xf32>
    %20 = vector.broadcast %19 : vector<16x1xf32> to vector<16x384xf32>
    %21 = arith.mulf %11, %20 : vector<16x384xf32>
    %c1 = arith.constant 1 : index
    %c0_10 = arith.constant 0 : index
    %22 = vector.load %arg3[%c1, %c0_10] : memref<4x384xf32, #tpu.memory_space<vmem>>, vector<1x384xf32>
    %23 = vector.broadcast %22 : vector<1x384xf32> to vector<16x384xf32>
    %24 = arith.mulf %21, %23 : vector<16x384xf32>
    %c2 = arith.constant 2 : index
    %c0_11 = arith.constant 0 : index
    %25 = vector.load %arg3[%c2, %c0_11] : memref<4x384xf32, #tpu.memory_space<vmem>>, vector<1x384xf32>
    %26 = vector.broadcast %25 : vector<1x384xf32> to vector<16x384xf32>
    %27 = arith.addf %24, %26 : vector<16x384xf32>
    %cst_12 = arith.constant 0.000000e+00 : f32
    %28 = vector.broadcast %cst_12 : f32 to vector<16x384xf32>
    %29 = arith.maximumf %27, %28 : vector<16x384xf32>
    %c3 = arith.constant 3 : index
    %c0_13 = arith.constant 0 : index
    %30 = vector.load %arg3[%c3, %c0_13] : memref<4x384xf32, #tpu.memory_space<vmem>>, vector<1x384xf32>
    %31 = vector.broadcast %30 : vector<1x384xf32> to vector<16x384xf32>
    %32 = arith.mulf %29, %31 : vector<16x384xf32>
    %cst_14 = arith.constant dense<0.000000e+00> : vector<16xf32>
    %33 = vector.multi_reduction <add>, %32, %cst_14 [1] : vector<16x384xf32> to vector<16xf32>
    %34 = vector.shape_cast %33 : vector<16xf32> to vector<16x1xf32>
    %c0_15 = arith.constant 0 : index
    %c0_16 = arith.constant 0 : index
    %35 = vector.load %arg4[%c0_15, %c0_16] : memref<1x128xf32, #tpu.memory_space<vmem>>, vector<1x128xf32>
    %36 = vector.broadcast %34 : vector<16x1xf32> to vector<16x128xf32>
    %37 = vector.broadcast %35 : vector<1x128xf32> to vector<16x128xf32>
    %38 = arith.addf %36, %37 : vector<16x128xf32>
    %c0_17 = arith.constant 0 : index
    %c0_18 = arith.constant 0 : index
    %39 = vector.load %arg5[%c0_17, %c0_18] : memref<16x128xf32, #tpu.memory_space<vmem>>, vector<16x128xf32>
    tpu.vector_store %arg5[%c0_17, %c0_18], %38 {strides = array<i32>} : memref<16x128xf32, #tpu.memory_space<vmem>>, vector<16x128xf32>,
    return
  }
  func.func @transform_0(%arg0: i32) -> (i32, i32) {
    %c0_i32 = arith.constant 0 : i32
    %c0_i32_0 = arith.constant 0 : i32
    return %arg0, %c0_i32 : i32, i32
  }
  func.func @transform_1(%arg0: i32) -> (i32, i32) {
    %c0_i32 = arith.constant 0 : i32
    %c0_i32_0 = arith.constant 0 : i32
    %c0_i32_1 = arith.constant 0 : i32
    return %c0_i32, %c0_i32_0 : i32, i32
  }
  func.func @transform_2(%arg0: i32) -> (i32, i32) {
    %c0_i32 = arith.constant 0 : i32
    %c0_i32_0 = arith.constant 0 : i32
    %c0_i32_1 = arith.constant 0 : i32
    return %c0_i32, %c0_i32_0 : i32, i32
  }
  func.func @transform_3(%arg0: i32) -> (i32, i32) {
    %c0_i32 = arith.constant 0 : i32
    %c0_i32_0 = arith.constant 0 : i32
    %c0_i32_1 = arith.constant 0 : i32
    return %c0_i32, %c0_i32_0 : i32, i32
  }
  func.func @transform_4(%arg0: i32) -> (i32, i32) {
    %c0_i32 = arith.constant 0 : i32
    %c0_i32_0 = arith.constant 0 : i32
    return %arg0, %c0_i32 : i32, i32
  }
}

</mosaic_0001>

<bundles_post_ra>
// kernel: convnext_fc_head.1
= control target key start
LH: loop header
LB: loop body
LE: loop exit
PB: predicated region body
PF: predicated region fallthrough
CT: control target
= control target key end

     0   :  { %s3132_s15 = smov 0   ;;  %s4404_s0 = inlined_call_operand.vmem [shape: bf16[32,1024], index: 0, kind: input, shape index: {}]   ;;  %s4405_s1 = inlined_call_operand.vmem [shape: bf16[1024,384], index: 1, kind: input, shape index: {}]   ;;  %s4406_s2 = inlined_call_operand.vmem [shape: f32[4,384], index: 2, kind: input, shape index: {}]   ;;  %s4407_s3 = inlined_call_operand.vmem [shape: f32[1,128], index: 3, kind: input, shape index: {}]   ;;  %s4408_s4 = inlined_call_operand.vmem [shape: f32[32,128], index: 4, kind: output, shape index: {}]  }
   0x1 LB: > { %s2066_s16 = sadd.s32 4294967295, %s3104_s15   ;;  %p2070_p0 = scmp.ge.s32.totalorder %s3104_s15, 1  ;;  %s3104_s15 = sphi %s3132_s15, %s14_s15  }
   0x2   : > { %p164_p1 = scmp.lt.s32.totalorder %s3104_s15, 3 }
   0x4   : > { %p165_p2 = pnand %p2070_p0, %p164_p1 }
   0x5   : > { %s2071_s7 = sshll.u32 (!%p165_p2), %s2066_s16, 1 }
   0x6   : > { %168 = sbr.rel (%p165_p2) target bundleno = 750 (0x2ee), region = 36  ;;  %p192_p3 = scmp.lt.s32.totalorder (!%p165_p2), %s2071_s7, 3 }
   0xb   : > { %v2194_v0 = vld [vmem:[%s4405_s1 + $0xa8] sm:$0xf]  ;;  %v2912_v1 = vld [vmem:[%s4405_s1 + $0xb0] sm:$0xf0]  ;;  %v2182_v11 = vld [vmem:[%s4405_s1 + $0x90] sm:$0xf] }
   0xc   : > { %v2290_v2 = vld [vmem:[%s4405_s1 + $0x168] sm:$0xf]  ;;  %v2195_v3 = vor.u32 %v2912_v1, %v2194_v0  ;;  %v2936_v4 = vld [vmem:[%s4405_s1 + $0x170] sm:$0xf0]  ;;  %v2909_v13 = vld [vmem:[%s4405_s1 + $0x98] sm:$0xf0] }
   0xd   : > { %v2386_v5 = vld [vmem:[%s4405_s1 + $0x228] sm:$0xf]  ;;  %v2960_v6 = vld [vmem:[%s4405_s1 + $0x230] sm:$0xf0]  ;;  %v2291_v7 = vor.u32 %v2936_v4, %v2290_v2  ;;  %v2278_v14 = vld [vmem:[%s4405_s1 + $0x150] sm:$0xf]  ;;  %v2183_v16 = vor.u32 %v2909_v13, %v2182_v11 }
   0xe   : > { %v2387_v8 = vor.u32 %v2960_v6, %v2386_v5  ;;  %v2482_v9 = vld [vmem:[%s4405_s1 + $0x2e8] sm:$0xf]  ;;  %v2984_v10 = vld [vmem:[%s4405_s1 + $0x2f0] sm:$0xf0]  ;;  %1540 = vmatpush.bf16.msra.mxu0 %v2195_v3  ;;  %v2933_v15 = vld [vmem:[%s4405_s1 + $0x158] sm:$0xf0] }
   0xf   : > { %v2483_v12 = vor.u32 %v2984_v10, %v2482_v9  ;;  %1554 = vmatpush.bf16.msra.mxu1 %v2291_v7  ;;  %v2279_v17 = vor.u32 %v2933_v15, %v2278_v14  ;;  %v2374_v18 = vld [vmem:[%s4405_s1 + $0x210] sm:$0xf]  ;;  %v2957_v19 = vld [vmem:[%s4405_s1 + $0x218] sm:$0xf0]  ;;  %v2170_v23 = vld [vmem:[%s4405_s1 + $0x78] sm:$0xf] }
  0x10   : > { %1568 = vmatpush.bf16.msra.mxu2 %v2387_v8  ;;  %v2470_v20 = vld [vmem:[%s4405_s1 + $0x2d0] sm:$0xf]  ;;  %v2375_v21 = vor.u32 %v2957_v19, %v2374_v18  ;;  %v2981_v22 = vld [vmem:[%s4405_s1 + $0x2d8] sm:$0xf0]  ;;  %v2906_v24 = vld [vmem:[%s4405_s1 + $0x80] sm:$0xf0] }
  0x11   : > { %1582 = vmatpush.bf16.msra.mxu3 %v2483_v12  ;;  %v2471_v25 = vor.u32 %v2981_v22, %v2470_v20  ;;  %v2266_v26 = vld [vmem:[%s4405_s1 + $0x138] sm:$0xf]  ;;  %v2930_v27 = vld [vmem:[%s4405_s1 + $0x140] sm:$0xf0]  ;;  %v2171_v29 = vor.u32 %v2906_v24, %v2170_v23  ;;  %v2158_v35 = vld [vmem:[%s4405_s1 + $0x60] sm:$0xf] }
  0x12   : > { %v2362_v28 = vld [vmem:[%s4405_s1 + $0x1f8] sm:$0xf]  ;;  %1541 = vmatpush.bf16.msra.mxu0 %v2183_v16  ;;  %v2954_v30 = vld [vmem:[%s4405_s1 + $0x200] sm:$0xf0]  ;;  %v2267_v33 = vor.u32 %v2930_v27, %v2266_v26  ;;  %v2903_v36 = vld [vmem:[%s4405_s1 + $0x68] sm:$0xf0] }
  0x13   : > { %v2458_v31 = vld [vmem:[%s4405_s1 + $0x2b8] sm:$0xf]  ;;  %v2978_v32 = vld [vmem:[%s4405_s1 + $0x2c0] sm:$0xf0]  ;;  %1555 = vmatpush.bf16.msra.mxu1 %v2279_v17  ;;  %v2363_v34 = vor.u32 %v2954_v30, %v2362_v28  ;;  %v2254_v37 = vld [vmem:[%s4405_s1 + $0x120] sm:$0xf]  ;;  %v2159_v44 = vor.u32 %v2903_v36, %v2158_v35 }
  0x14   : > { %1569 = vmatpush.bf16.msra.mxu2 %v2375_v21  ;;  %v2459_v38 = vor.u32 %v2978_v32, %v2458_v31  ;;  %v2927_v39 = vld [vmem:[%s4405_s1 + $0x128] sm:$0xf0]  ;;  %v2350_v40 = vld [vmem:[%s4405_s1 + $0x1e0] sm:$0xf]  ;;  %v2146_v47 = vld [vmem:[%s4405_s1 + $0x48] sm:$0xf] }
  0x15   : > { %1583 = vmatpush.bf16.msra.mxu3 %v2471_v25  ;;  %v2951_v41 = vld [vmem:[%s4405_s1 + $0x1e8] sm:$0xf0]  ;;  %v2446_v42 = vld [vmem:[%s4405_s1 + $0x2a0] sm:$0xf]  ;;  %v2255_v45 = vor.u32 %v2927_v39, %v2254_v37  ;;  %v2900_v48 = vld [vmem:[%s4405_s1 + $0x50] sm:$0xf0] }
  0x16   : > { %v2975_v43 = vld [vmem:[%s4405_s1 + $0x2a8] sm:$0xf0]  ;;  %1542 = vmatpush.bf16.msra.mxu0 %v2171_v29  ;;  %v2351_v46 = vor.u32 %v2951_v41, %v2350_v40  ;;  %v2242_v49 = vld [vmem:[%s4405_s1 + $0x108] sm:$0xf]  ;;  %v2924_v51 = vld [vmem:[%s4405_s1 + $0x110] sm:$0xf0]  ;;  %v2147_v56 = vor.u32 %v2900_v48, %v2146_v47 }
  0x17   : > { %1556 = vmatpush.bf16.msra.mxu1 %v2267_v33  ;;  %v2447_v50 = vor.u32 %v2975_v43, %v2446_v42  ;;  %v2338_v52 = vld [vmem:[%s4405_s1 + $0x1c8] sm:$0xf]  ;;  %v2948_v53 = vld [vmem:[%s4405_s1 + $0x1d0] sm:$0xf0]  ;;  %v2243_v57 = vor.u32 %v2924_v51, %v2242_v49  ;;  %v2134_v59 = vld [vmem:[%s4405_s1 + $0x30] sm:$0xf] }
  0x18   : > { %1570 = vmatpush.bf16.msra.mxu2 %v2363_v34  ;;  %v2434_v54 = vld [vmem:[%s4405_s1 + $0x288] sm:$0xf]  ;;  %v2972_v55 = vld [vmem:[%s4405_s1 + $0x290] sm:$0xf0]  ;;  %v2339_v58 = vor.u32 %v2948_v53, %v2338_v52  ;;  %v2897_v60 = vld [vmem:[%s4405_s1 + $0x38] sm:$0xf0] }
  0x19   : > { %1584 = vmatpush.bf16.msra.mxu3 %v2459_v38  ;;  %v2230_v61 = vld [vmem:[%s4405_s1 + $0xf0] sm:$0xf]  ;;  %v2435_v62 = vor.u32 %v2972_v55, %v2434_v54  ;;  %v2921_v63 = vld [vmem:[%s4405_s1 + $0xf8] sm:$0xf0]  ;;  %v2135_v4 = vor.u32 %v2897_v60, %v2134_v59  ;;  %v2122_v7 = vld [vmem:[%s4405_s1 + $0x18] sm:$0xf] }
  0x1a   : > { %1543 = vmatpush.bf16.msra.mxu0 %v2159_v44  ;;  %v2326_v0 = vld [vmem:[%s4405_s1 + $0x1b0] sm:$0xf]  ;;  %v2945_v1 = vld [vmem:[%s4405_s1 + $0x1b8] sm:$0xf0]  ;;  %v2231_v5 = vor.u32 %v2921_v63, %v2230_v61  ;;  %v2894_v8 = vld [vmem:[%s4405_s1 + $0x20] sm:$0xf0] }
  0x1b   : > { %1557 = vmatpush.bf16.msra.mxu1 %v2255_v45  ;;  %v2422_v2 = vld [vmem:[%s4405_s1 + $0x270] sm:$0xf]  ;;  %v2969_v3 = vld [vmem:[%s4405_s1 + $0x278] sm:$0xf0]  ;;  %v2327_v6 = vor.u32 %v2945_v1, %v2326_v0  ;;  %v2218_v9 = vld [vmem:[%s4405_s1 + $0xd8] sm:$0xf]  ;;  %v2123_v16 = vor.u32 %v2894_v8, %v2122_v7 }
  0x1c   : > { %1571 = vmatpush.bf16.msra.mxu2 %v2351_v46  ;;  %v2423_v10 = vor.u32 %v2969_v3, %v2422_v2  ;;  %v2918_v11 = vld [vmem:[%s4405_s1 + $0xe0] sm:$0xf0]  ;;  %v2314_v12 = vld [vmem:[%s4405_s1 + $0x198] sm:$0xf]  ;;  %v2110_v17 = vld [vmem:[%s4405_s1] sm:$0xf] }
  0x1d   : > { %1585 = vmatpush.bf16.msra.mxu3 %v2447_v50  ;;  %v2942_v13 = vld [vmem:[%s4405_s1 + $0x1a0] sm:$0xf0]  ;;  %v2410_v14 = vld [vmem:[%s4405_s1 + $0x258] sm:$0xf]  ;;  %v2891_v18 = vld [vmem:[%s4405_s1 + $0x8] sm:$0xf0]  ;;  %v2219_v19 = vor.u32 %v2918_v11, %v2218_v9 }
  0x1e   : > { %1544 = vmatpush.bf16.msra.mxu0 %v2147_v56  ;;  %v2966_v15 = vld [vmem:[%s4405_s1 + $0x260] sm:$0xf0]  ;;  %v2315_v20 = vor.u32 %v2942_v13, %v2314_v12  ;;  %v2206_v21 = vld [vmem:[%s4405_s1 + $0xc0] sm:$0xf]  ;;  %v2915_v22 = vld [vmem:[%s4405_s1 + $0xc8] sm:$0xf0]  ;;  %v2111_v31 = vor.u32 %v2891_v18, %v2110_v17 }
  0x1f   : > { %1558 = vmatpush.bf16.msra.mxu1 %v2243_v57  ;;  %v2302_v23 = vld [vmem:[%s4405_s1 + $0x180] sm:$0xf]  ;;  %v2411_v24 = vor.u32 %v2966_v15, %v2410_v14  ;;  %v2939_v25 = vld [vmem:[%s4405_s1 + $0x188] sm:$0xf0]  ;;  %v2578_v28 = vld [vmem:[%s4405_s1 + $0x3a8] sm:$0xf]  ;;  %v2207_v35 = vor.u32 %v2915_v22, %v2206_v21 }
  0x20   : > { %1572 = vmatpush.bf16.msra.mxu2 %v2339_v58  ;;  %v2398_v26 = vld [vmem:[%s4405_s1 + $0x240] sm:$0xf]  ;;  %v2963_v27 = vld [vmem:[%s4405_s1 + $0x248] sm:$0xf0]  ;;  %v3008_v29 = vld [vmem:[%s4405_s1 + $0x3b0] sm:$0xf0]  ;;  %v2303_v36 = vor.u32 %v2939_v25, %v2302_v23 }
  0x21   : > { %1586 = vmatpush.bf16.msra.mxu3 %v2435_v62  ;;  %v2674_v30 = vld [vmem:[%s4405_s1 + $0x468] sm:$0xf]  ;;  %v3032_v32 = vld [vmem:[%s4405_s1 + $0x470] sm:$0xf0]  ;;  %v2399_v39 = vor.u32 %v2963_v27, %v2398_v26  ;;  %v2579_v40 = vor.u32 %v3008_v29, %v2578_v28  ;;  %v2566_v43 = vld [vmem:[%s4405_s1 + $0x390] sm:$0xf] }
  0x22   : > { %1545 = vmatpush.bf16.msra.mxu0 %v2135_v4  ;;  %v2770_v33 = vld [vmem:[%s4405_s1 + $0x528] sm:$0xf]  ;;  %v3056_v34 = vld [vmem:[%s4405_s1 + $0x530] sm:$0xf0]  ;;  %v2675_v41 = vor.u32 %v3032_v32, %v2674_v30  ;;  %v3005_v44 = vld [vmem:[%s4405_s1 + $0x398] sm:$0xf0] }
  0x23   : > { %1559 = vmatpush.bf16.msra.mxu1 %v2231_v5  ;;  %v2866_v37 = vld [vmem:[%s4405_s1 + $0x5e8] sm:$0xf]  ;;  %v3080_v38 = vld [vmem:[%s4405_s1 + $0x5f0] sm:$0xf0]  ;;  %v2771_v42 = vor.u32 %v3056_v34, %v2770_v33  ;;  %v2662_v45 = vld [vmem:[%s4405_s1 + $0x450] sm:$0xf]  ;;  %v2567_v52 = vor.u32 %v3005_v44, %v2566_v43 }
  0x24   : > { %1573 = vmatpush.bf16.msra.mxu2 %v2327_v6  ;;  %v2867_v46 = vor.u32 %v3080_v38, %v2866_v37  ;;  %v3029_v47 = vld [vmem:[%s4405_s1 + $0x458] sm:$0xf0]  ;;  %v2758_v48 = vld [vmem:[%s4405_s1 + $0x510] sm:$0xf]  ;;  %v2554_v53 = vld [vmem:[%s4405_s1 + $0x378] sm:$0xf] }
  0x25   : > { %1587 = vmatpush.bf16.msra.mxu3 %v2423_v10  ;;  %v3053_v49 = vld [vmem:[%s4405_s1 + $0x518] sm:$0xf0]  ;;  %v2854_v50 = vld [vmem:[%s4405_s1 + $0x5d0] sm:$0xf]  ;;  %v3002_v54 = vld [vmem:[%s4405_s1 + $0x380] sm:$0xf0]  ;;  %v2663_v55 = vor.u32 %v3029_v47, %v2662_v45 }
  0x26   : > { %1546 = vmatpush.bf16.msra.mxu0 %v2123_v16  ;;  %v3077_v51 = vld [vmem:[%s4405_s1 + $0x5d8] sm:$0xf0]  ;;  %v2759_v56 = vor.u32 %v3053_v49, %v2758_v48  ;;  %v2650_v57 = vld [vmem:[%s4405_s1 + $0x438] sm:$0xf]  ;;  %v3026_v58 = vld [vmem:[%s4405_s1 + $0x440] sm:$0xf0]  ;;  %v2555_v2 = vor.u32 %v3002_v54, %v2554_v53 }
  0x27   : > { %1560 = vmatpush.bf16.msra.mxu1 %v2219_v19  ;;  %v2746_v59 = vld [vmem:[%s4405_s1 + $0x4f8] sm:$0xf]  ;;  %v2855_v60 = vor.u32 %v3077_v51, %v2854_v50  ;;  %v3050_v61 = vld [vmem:[%s4405_s1 + $0x500] sm:$0xf0]  ;;  %s4410_s7 = smov (!%p192_p3, %s2071_s7), 3  ;;  %v2651_v6 = vor.u32 %v3026_v58, %v2650_v57 }
  0x28   : > { %1574 = vmatpush.bf16.msra.mxu2 %v2315_v20  ;;  %v2842_v62 = vld [vmem:[%s4405_s1 + $0x5b8] sm:$0xf]  ;;  %v3074_v63 = vld [vmem:[%s4405_s1 + $0x5c0] sm:$0xf0]  ;;  %v2542_v0 = vld [vmem:[%s4405_s1 + $0x360] sm:$0xf]  ;;  %v2747_v7 = vor.u32 %v3050_v61, %v2746_v59 }
  0x29   : > { %1588 = vmatpush.bf16.msra.mxu3 %v2411_v24  ;;  %v2999_v1 = vld [vmem:[%s4405_s1 + $0x368] sm:$0xf0]  ;;  %v2638_v3 = vld [vmem:[%s4405_s1 + $0x420] sm:$0xf]  ;;  %s2881_s10 = sshll.u32 %s4410_s7, 5  ;;  %v2843_v11 = vor.u32 %v3074_v63, %v2842_v62  ;;  %s2075_s6 = sshll.u32 %s4410_s7, 3 }
  0x2a   : > { %1547 = vmatpush.bf16.msra.mxu0 %v2111_v31  ;;  %v3023_v4 = vld [vmem:[%s4405_s1 + $0x428] sm:$0xf0]  ;;  %v2734_v5 = vld [vmem:[%s4405_s1 + $0x4e0] sm:$0xf]  ;;  %s3436_s20 = scalar_lea.vmem %s4404_s0, %s2881_s10  ;;  %v2543_v19 = vor.u32 %v2999_v1, %v2542_v0  ;;  %v2530_v26 = vld [vmem:[%s4405_s1 + $0x348] sm:$0xf]  ;;  %s202_s12 = scalar_lea.vmem %s4408_s4, %s2075_s6 }
  0x2b   : > { %1561 = vmatpush.bf16.msra.mxu1 %v2207_v35  ;;  %v3047_v8 = vld [vmem:[%s4405_s1 + $0x4e8] sm:$0xf0]  ;;  %v2830_v9 = vld [vmem:[%s4405_s1 + $0x5a0] sm:$0xf]  ;;  %v2086_v14 = vld [vmem:[%s3436_s20 + $0x8] sm:$0xf]  ;;  %v2639_v24 = vor.u32 %v3023_v4, %v2638_v3 }
  0x2c   : > { %1575 = vmatpush.bf16.msra.mxu2 %v2303_v36  ;;  %v3071_v10 = vld [vmem:[%s4405_s1 + $0x5a8] sm:$0xf0]  ;;  %v2078_v12 = vld [vmem:[%s3436_s20] sm:$0xf]  ;;  %v2887_v16 = vld [vmem:[%s3436_s20 + $0x24] sm:$0xf0]  ;;  %v2735_v25 = vor.u32 %v3047_v8, %v2734_v5 }
  0x2d   : > { %1589 = vmatpush.bf16.msra.mxu3 %v2399_v39  ;;  %v2886_v13 = vld [vmem:[%s3436_s20 + $0x1c] sm:$0xf0]  ;;  %v2882_v17 = vld [vmem:[%s3436_s20 + $0x4] sm:$0xf]  ;;  %v3446_v20 = vor.u32 %v2887_v16, %v2086_v14  ;;  %v2883_v22 = vld [vmem:[%s3436_s20 + $0xc] sm:$0xf]  ;;  %v2831_v30 = vor.u32 %v3071_v10, %v2830_v9 }
  0x2e   : > { %1596 = vmatpush.bf16.msrb.mxu0 %v2579_v40  ;;  %v3441_v15 = vor.u32 %v2886_v13, %v2078_v12  ;;  %v2080_v18 = vld [vmem:[%s3436_s20 + $0x20] sm:$0xf0]  ;;  %v2088_v23 = vld [vmem:[%s3436_s20 + $0x28] sm:$0xf0]  ;;  %v2996_v27 = vld [vmem:[%s4405_s1 + $0x350] sm:$0xf0] }
  0x2f   : > { %1610 = vmatpush.bf16.msrb.mxu1 %v2675_v41  ;;  %v3448_v21 = vor.u32 %v2882_v17, %v2080_v18  ;;  %v2626_v28 = vld [vmem:[%s4405_s1 + $0x408] sm:$0xf]  ;;  %v3461_v29 = vor.u32 %v2883_v22, %v2088_v23  ;;  %v3020_v31 = vld [vmem:[%s4405_s1 + $0x410] sm:$0xf0]  ;;  %1576 = vmatmul.bf16.vlgmr.msra.gmra.mxu2 %v3446_v20  ;;  %v2531_v36 = vor.u32 %v2996_v27, %v2530_v26  ;;  %v2518_v39 = vld [vmem:[%s4405_s1 + $0x330] sm:$0xf] }
  0x30   : > { %1624 = vmatpush.bf16.msrb.mxu2 %v2771_v42  ;;  %1548 = vmatmul.bf16.vlgmr.msra.gmra.mxu0 %v3441_v15  ;;  %v2722_v32 = vld [vmem:[%s4405_s1 + $0x4c8] sm:$0xf]  ;;  %v3044_v33 = vld [vmem:[%s4405_s1 + $0x4d0] sm:$0xf0]  ;;  %v2627_v37 = vor.u32 %v3020_v31, %v2626_v28  ;;  %v2993_v40 = vld [vmem:[%s4405_s1 + $0x338] sm:$0xf0] }
  0x31   : > { %1638 = vmatpush.bf16.msrb.mxu3 %v2867_v46  ;;  %v2818_v34 = vld [vmem:[%s4405_s1 + $0x588] sm:$0xf]  ;;  %v3068_v35 = vld [vmem:[%s4405_s1 + $0x590] sm:$0xf0]  ;;  %1562 = vmatmul.bf16.vlgmr.msra.gmra.mxu1 %v3448_v21  ;;  %v2723_v38 = vor.u32 %v3044_v33, %v2722_v32  ;;  %v2614_v41 = vld [vmem:[%s4405_s1 + $0x3f0] sm:$0xf]  ;;  %v2519_v48 = vor.u32 %v2993_v40, %v2518_v39 }
  0x32   : > { %1597 = vmatpush.bf16.msrb.mxu0 %v2567_v52  ;;  %1590 = vmatmul.bf16.vlgmr.msra.gmra.mxu3 %v3461_v29  ;;  %v2819_v42 = vor.u32 %v3068_v35, %v2818_v34  ;;  %v3017_v43 = vld [vmem:[%s4405_s1 + $0x3f8] sm:$0xf0]  ;;  %v2710_v44 = vld [vmem:[%s4405_s1 + $0x4b0] sm:$0xf]  ;;  %v2506_v49 = vld [vmem:[%s4405_s1 + $0x318] sm:$0xf] }
  0x33   : > { %1611 = vmatpush.bf16.msrb.mxu1 %v2663_v55  ;;  %v3041_v45 = vld [vmem:[%s4405_s1 + $0x4b8] sm:$0xf0]  ;;  %v2806_v46 = vld [vmem:[%s4405_s1 + $0x570] sm:$0xf]  ;;  %v2615_v50 = vor.u32 %v3017_v43, %v2614_v41  ;;  %v2990_v52 = vld [vmem:[%s4405_s1 + $0x320] sm:$0xf0] }
  0x34   : > { %1625 = vmatpush.bf16.msrb.mxu2 %v2759_v56  ;;  %v3065_v47 = vld [vmem:[%s4405_s1 + $0x578] sm:$0xf0]  ;;  %v2711_v51 = vor.u32 %v3041_v45, %v2710_v44  ;;  %v2602_v53 = vld [vmem:[%s4405_s1 + $0x3d8] sm:$0xf]  ;;  %v3014_v54 = vld [vmem:[%s4405_s1 + $0x3e0] sm:$0xf0]  ;;  %v2507_v62 = vor.u32 %v2990_v52, %v2506_v49 }
  0x35   : > { %1639 = vmatpush.bf16.msrb.mxu3 %v2855_v60  ;;  %v2807_v55 = vor.u32 %v3065_v47, %v2806_v46  ;;  %v2698_v56 = vld [vmem:[%s4405_s1 + $0x498] sm:$0xf]  ;;  %v3038_v57 = vld [vmem:[%s4405_s1 + $0x4a0] sm:$0xf0]  ;;  %v2494_v60 = vld [vmem:[%s4405_s1 + $0x300] sm:$0xf]  ;;  %v2603_v3 = vor.u32 %v3014_v54, %v2602_v53 }
  0x36   : > { %1598 = vmatpush.bf16.msrb.mxu0 %v2555_v2  ;;  %v2794_v58 = vld [vmem:[%s4405_s1 + $0x558] sm:$0xf]  ;;  %v3062_v59 = vld [vmem:[%s4405_s1 + $0x560] sm:$0xf0]  ;;  %v2987_v61 = vld [vmem:[%s4405_s1 + $0x308] sm:$0xf0]  ;;  %v2699_v4 = vor.u32 %v3038_v57, %v2698_v56 }
  0x37   : > { %1612 = vmatpush.bf16.msrb.mxu1 %v2651_v6  ;;  %v2590_v63 = vld [vmem:[%s4405_s1 + $0x3c0] sm:$0xf]  ;;  %v3011_v0 = vld [vmem:[%s4405_s1 + $0x3c8] sm:$0xf0]  ;;  %v2795_v8 = vor.u32 %v3062_v59, %v2794_v58  ;;  %v2196_v9 = vld [vmem:[%s4405_s1 + $0xb4] sm:$0xf0]  ;;  %v2495_v16 = vor.u32 %v2987_v61, %v2494_v60 }
  0x38   : > { %1626 = vmatpush.bf16.msrb.mxu2 %v2747_v7  ;;  %v2686_v1 = vld [vmem:[%s4405_s1 + $0x480] sm:$0xf]  ;;  %v3035_v2 = vld [vmem:[%s4405_s1 + $0x488] sm:$0xf0]  ;;  %v2388_v13 = vld [vmem:[%s4405_s1 + $0x234] sm:$0xf0]  ;;  %v2591_v22 = vor.u32 %v3011_v0, %v2590_v63 }
  0x39   : > { %1640 = vmatpush.bf16.msrb.mxu3 %v2843_v11  ;;  %v2782_v5 = vld [vmem:[%s4405_s1 + $0x540] sm:$0xf]  ;;  %v3059_v6 = vld [vmem:[%s4405_s1 + $0x548] sm:$0xf0]  ;;  %v2292_v11 = vld [vmem:[%s4405_s1 + $0x174] sm:$0xf0]  ;;  %v2687_v23 = vor.u32 %v3035_v2, %v2686_v1 }
  0x3a   : > { %1599 = vmatpush.bf16.msrb.mxu0 %v2543_v19  ;;  %v2911_v7 = vld [vmem:[%s4405_s1 + $0xac] sm:$0xf]  ;;  %v2484_v17 = vld [vmem:[%s4405_s1 + $0x2f4] sm:$0xf0]  ;;  %v2094_v18 = vld [vmem:[%s3436_s20 + $0x10] sm:$0xf]  ;;  %v2783_v27 = vor.u32 %v3059_v6, %v2782_v5 }
  0x3b   : > { %1613 = vmatpush.bf16.msrb.mxu1 %v2639_v24  ;;  %v2935_v10 = vld [vmem:[%s4405_s1 + $0x16c] sm:$0xf]  ;;  %v2888_v19 = vld [vmem:[%s3436_s20 + $0x2c] sm:$0xf0]  ;;  %v2102_v24 = vld [vmem:[%s3436_s20 + $0x18] sm:$0xf]  ;;  %v2199_v28 = vor.u32 %v2911_v7, %v2196_v9 }
  0x3c   : > { %1627 = vmatpush.bf16.msrb.mxu2 %v2735_v25  ;;  %v2959_v12 = vld [vmem:[%s4405_s1 + $0x22c] sm:$0xf]  ;;  %v2889_v25 = vld [vmem:[%s3436_s20 + $0x34] sm:$0xf0]  ;;  %v2884_v26 = vld [vmem:[%s3436_s20 + $0x14] sm:$0xf]  ;;  %v2295_v33 = vor.u32 %v2935_v10, %v2292_v11  ;;  %v3595_v39 = vor.u32 %v2888_v19, %v2094_v18 }
  0x3d   : > { %1641 = vmatpush.bf16.msrb.mxu3 %v2831_v30  ;;  %v2983_v14 = vld [vmem:[%s4405_s1 + $0x2ec] sm:$0xf]  ;;  %v2096_v30 = vld [vmem:[%s3436_s20 + $0x30] sm:$0xf0]  ;;  %v2885_v31 = vld [vmem:[%s3436_s20 + $0x1c] sm:$0xf]  ;;  %v2391_v34 = vor.u32 %v2959_v12, %v2388_v13  ;;  %v3606_v43 = vor.u32 %v2889_v25, %v2102_v24 }
  0x3e   : > { %1600 = vmatpush.bf16.msrb.mxu0 %v2531_v36  ;;  %v2104_v32 = vld [vmem:[%s3436_s20 + $0x38] sm:$0xf0]  ;;  %v2908_v35 = vld [vmem:[%s4405_s1 + $0x94] sm:$0xf]  ;;  %v2184_v36 = vld [vmem:[%s4405_s1 + $0x9c] sm:$0xf0]  ;;  %v3608_v44 = vor.u32 %v2884_v26, %v2096_v30 }
  0x3f   : > { %1614 = vmatpush.bf16.msrb.mxu1 %v2627_v37  ;;  %v2932_v37 = vld [vmem:[%s4405_s1 + $0x154] sm:$0xf]  ;;  %v2280_v40 = vld [vmem:[%s4405_s1 + $0x15c] sm:$0xf0]  ;;  %v3616_v47 = vor.u32 %v2885_v31, %v2104_v32  ;;  %v2172_v52 = vld [vmem:[%s4405_s1 + $0x84] sm:$0xf0] }
  0x40   : > { %1628 = vmatpush.bf16.msrb.mxu2 %v2723_v38  ;;  %v2487_v38 = vor.u32 %v2983_v14, %v2484_v17  ;;  %v2956_v41 = vld [vmem:[%s4405_s1 + $0x214] sm:$0xf]  ;;  %v2472_v46 = vld [vmem:[%s4405_s1 + $0x2dc] sm:$0xf0]  ;;  %v2283_v49 = vor.u32 %v2932_v37, %v2280_v40  ;;  %v2929_v53 = vld [vmem:[%s4405_s1 + $0x13c] sm:$0xf] }
  0x41   : > { %1642 = vmatpush.bf16.msrb.mxu3 %v2819_v42  ;;  %v2376_v42 = vld [vmem:[%s4405_s1 + $0x21c] sm:$0xf0]  ;;  %v2980_v45 = vld [vmem:[%s4405_s1 + $0x2d4] sm:$0xf]  ;;  %v2953_v56 = vld [vmem:[%s4405_s1 + $0x1fc] sm:$0xf] }
  0x42   : > { %1601 = vmatpush.bf16.msrb.mxu0 %v2519_v48  ;;  %v2187_v48 = vor.u32 %v2908_v35, %v2184_v36  ;;  %v2475_v54 = vor.u32 %v2980_v45, %v2472_v46  ;;  %v2364_v57 = vld [vmem:[%s4405_s1 + $0x204] sm:$0xf0]  ;;  %v2977_v58 = vld [vmem:[%s4405_s1 + $0x2bc] sm:$0xf]  ;;  %v2902_v63 = vld [vmem:[%s4405_s1 + $0x64] sm:$0xf] }
  0x43   : > { %1615 = vmatpush.bf16.msrb.mxu1 %v2615_v50  ;;  %v2379_v50 = vor.u32 %v2956_v41, %v2376_v42  ;;  %v2460_v59 = vld [vmem:[%s4405_s1 + $0x2c4] sm:$0xf0]  ;;  %v2160_v0 = vld [vmem:[%s4405_s1 + $0x6c] sm:$0xf0]  ;;  %v2926_v1 = vld [vmem:[%s4405_s1 + $0x124] sm:$0xf] }
  0x44   : > { %1629 = vmatpush.bf16.msrb.mxu2 %v2711_v51  ;;  %v2905_v51 = vld [vmem:[%s4405_s1 + $0x7c] sm:$0xf]  ;;  %v2463_v2 = vor.u32 %v2977_v58, %v2460_v59  ;;  %v2352_v5 = vld [vmem:[%s4405_s1 + $0x1ec] sm:$0xf0]  ;;  %v2974_v6 = vld [vmem:[%s4405_s1 + $0x2a4] sm:$0xf] }
  0x45   : > { %1643 = vmatpush.bf16.msrb.mxu3 %v2807_v55  ;;  %v2268_v55 = vld [vmem:[%s4405_s1 + $0x144] sm:$0xf0]  ;;  %v2175_v60 = vor.u32 %v2905_v51, %v2172_v52  ;;  %v2448_v7 = vld [vmem:[%s4405_s1 + $0x2ac] sm:$0xf0]  ;;  %v2899_v11 = vld [vmem:[%s4405_s1 + $0x4c] sm:$0xf] }
  0x46   : > { %1602 = vmatpush.bf16.msrb.mxu0 %v2507_v62  ;;  %v2271_v61 = vor.u32 %v2929_v53, %v2268_v55  ;;  %v2367_v62 = vor.u32 %v2953_v56, %v2364_v57  ;;  %v2148_v12 = vld [vmem:[%s4405_s1 + $0x54] sm:$0xf0]  ;;  %v2923_v13 = vld [vmem:[%s4405_s1 + $0x10c] sm:$0xf]  ;;  %v2451_v14 = vor.u32 %v2974_v6, %v2448_v7  ;;  %v2896_v26 = vld [vmem:[%s4405_s1 + $0x34] sm:$0xf] }
  0x47   : > { %1616 = vmatpush.bf16.msrb.mxu1 %v2603_v3  ;;  %v2256_v3 = vld [vmem:[%s4405_s1 + $0x12c] sm:$0xf0]  ;;  %v2947_v17 = vld [vmem:[%s4405_s1 + $0x1cc] sm:$0xf]  ;;  %v2340_v18 = vld [vmem:[%s4405_s1 + $0x1d4] sm:$0xf0] }
  0x48   : > { %1630 = vmatpush.bf16.msrb.mxu2 %v2699_v4  ;;  %v2950_v4 = vld [vmem:[%s4405_s1 + $0x1e4] sm:$0xf]  ;;  %v2259_v9 = vor.u32 %v2926_v1, %v2256_v3  ;;  %v2971_v19 = vld [vmem:[%s4405_s1 + $0x28c] sm:$0xf]  ;;  %v2343_v25 = vor.u32 %v2947_v17, %v2340_v18  ;;  %v2232_v31 = vld [vmem:[%s4405_s1 + $0xfc] sm:$0xf0] }
  0x49   : > { %1644 = vmatpush.bf16.msrb.mxu3 %v2795_v8  ;;  %v2163_v8 = vor.u32 %v2902_v63, %v2160_v0  ;;  %v2355_v10 = vor.u32 %v2950_v4, %v2352_v5  ;;  %v2944_v32 = vld [vmem:[%s4405_s1 + $0x1b4] sm:$0xf]  ;;  %v2424_v35 = vld [vmem:[%s4405_s1 + $0x27c] sm:$0xf0]  ;;  %v2893_v40 = vld [vmem:[%s4405_s1 + $0x1c] sm:$0xf] }
  0x4a   : > { %1603 = vmatpush.bf16.msrb.mxu0 %v2495_v16  ;;  %v2244_v16 = vld [vmem:[%s4405_s1 + $0x114] sm:$0xf0]  ;;  %v2124_v41 = vld [vmem:[%s4405_s1 + $0x24] sm:$0xf0]  ;;  %v2917_v42 = vld [vmem:[%s4405_s1 + $0xdc] sm:$0xf] }
  0x4b   : > { %1617 = vmatpush.bf16.msrb.mxu1 %v2591_v22  ;;  %v2436_v22 = vld [vmem:[%s4405_s1 + $0x294] sm:$0xf0]  ;;  %v2247_v24 = vor.u32 %v2923_v13, %v2244_v16  ;;  %v2220_v46 = vld [vmem:[%s4405_s1 + $0xe4] sm:$0xf0]  ;;  %v2127_v52 = vor.u32 %v2893_v40, %v2124_v41  ;;  %v2890_v53 = vld [vmem:[%s4405_s1 + $0x4] sm:$0xf] }
  0x4c   : > { %1631 = vmatpush.bf16.msrb.mxu2 %v2687_v23  ;;  %v2151_v23 = vor.u32 %v2899_v11, %v2148_v12  ;;  %v2439_v30 = vor.u32 %v2971_v19, %v2436_v22  ;;  %v2412_v51 = vld [vmem:[%s4405_s1 + $0x264] sm:$0xf0]  ;;  %v2223_v55 = vor.u32 %v2917_v42, %v2220_v46  ;;  %v2914_v57 = vld [vmem:[%s4405_s1 + $0xc4] sm:$0xf]  ;;  %v2208_v58 = vld [vmem:[%s4405_s1 + $0xcc] sm:$0xf0] }
  0x4d   : > { %1645 = vmatpush.bf16.msrb.mxu3 %v2783_v27  ;;  %1604 = vmatmul.bf16.vlgmr.msrb.gmra.mxu0 %v3595_v39  ;;  %v2136_v27 = vld [vmem:[%s4405_s1 + $0x3c] sm:$0xf0]  ;;  %v2938_v59 = vld [vmem:[%s4405_s1 + $0x184] sm:$0xf]  ;;  %v2400_v63 = vld [vmem:[%s4405_s1 + $0x24c] sm:$0xf0]  ;;  %v2211_v7 = vor.u32 %v2914_v57, %v2208_v58 }
  0x4e   : > { %1652 = vmatpush.bf16.msra.mxu0 %v2199_v28  ;;  %1618 = vmatmul.bf16.vlgmr.msrb.gmra.mxu1 %v3608_v44  ;;  %v2920_v28 = vld [vmem:[%s4405_s1 + $0xf4] sm:$0xf]  ;;  %v2139_v36 = vor.u32 %v2896_v26, %v2136_v27  ;;  %v3007_v0 = vld [vmem:[%s4405_s1 + $0x3ac] sm:$0xf]  ;;  %v2580_v1 = vld [vmem:[%s4405_s1 + $0x3b4] sm:$0xf0] }
  0x4f   : > { %1666 = vmatpush.bf16.msra.mxu1 %v2295_v33  ;;  %1632 = vmatmul.bf16.vlgmr.msrb.gmra.mxu2 %v3606_v43  ;;  %v2328_v33 = vld [vmem:[%s4405_s1 + $0x1bc] sm:$0xf0]  ;;  %v2235_v37 = vor.u32 %v2920_v28, %v2232_v31  ;;  %v2676_v4 = vld [vmem:[%s4405_s1 + $0x474] sm:$0xf0]  ;;  %v3055_v5 = vld [vmem:[%s4405_s1 + $0x52c] sm:$0xf]  ;;  %v2583_v12 = vor.u32 %v3007_v0, %v2580_v1 }
  0x50   : > { %1680 = vmatpush.bf16.msra.mxu2 %v2391_v34  ;;  %1646 = vmatmul.bf16.vlgmr.msrb.gmra.mxu3 %v3616_v47  ;;  %v2968_v34 = vld [vmem:[%s4405_s1 + $0x274] sm:$0xf]  ;;  %v2772_v6 = vld [vmem:[%s4405_s1 + $0x534] sm:$0xf0]  ;;  %v2568_v17 = vld [vmem:[%s4405_s1 + $0x39c] sm:$0xf0] }
  0x51   : > { %1694 = vmatpush.bf16.msra.mxu3 %v2487_v38  ;;  %v2331_v38 = vor.u32 %v2944_v32, %v2328_v33  ;;  %v2427_v45 = vor.u32 %v2968_v34, %v2424_v35  ;;  %v3004_v16 = vld [vmem:[%s4405_s1 + $0x394] sm:$0xf]  ;;  %v2664_v22 = vld [vmem:[%s4405_s1 + $0x45c] sm:$0xf0]  ;;  %v3001_v31 = vld [vmem:[%s4405_s1 + $0x37c] sm:$0xf] }
  0x52   : > { %1653 = vmatpush.bf16.msra.mxu0 %v2187_v48  ;;  %v2941_v48 = vld [vmem:[%s4405_s1 + $0x19c] sm:$0xf]  ;;  %v3028_v18 = vld [vmem:[%s4405_s1 + $0x454] sm:$0xf]  ;;  %v2856_v26 = vld [vmem:[%s4405_s1 + $0x5dc] sm:$0xf0]  ;;  %v2571_v27 = vor.u32 %v3004_v16, %v2568_v17 }
  0x53   : > { %1667 = vmatpush.bf16.msra.mxu1 %v2283_v49  ;;  %v2316_v49 = vld [vmem:[%s4405_s1 + $0x1a4] sm:$0xf0]  ;;  %v2667_v28 = vor.u32 %v3028_v18, %v2664_v22  ;;  %v3025_v33 = vld [vmem:[%s4405_s1 + $0x43c] sm:$0xf]  ;;  %v2998_v46 = vld [vmem:[%s4405_s1 + $0x364] sm:$0xf] }
  0x54   : > { %1681 = vmatpush.bf16.msra.mxu2 %v2379_v50  ;;  %v2965_v50 = vld [vmem:[%s4405_s1 + $0x25c] sm:$0xf]  ;;  %v2319_v56 = vor.u32 %v2941_v48, %v2316_v49  ;;  %v2556_v32 = vld [vmem:[%s4405_s1 + $0x384] sm:$0xf0]  ;;  %v2544_v48 = vld [vmem:[%s4405_s1 + $0x36c] sm:$0xf0] }
  0x55   : > { %1695 = vmatpush.bf16.msra.mxu3 %v2475_v54  ;;  %v2112_v54 = vld [vmem:[%s4405_s1 + $0xc] sm:$0xf0]  ;;  %v2652_v35 = vld [vmem:[%s4405_s1 + $0x444] sm:$0xf0]  ;;  %v2559_v41 = vor.u32 %v3001_v31, %v2556_v32  ;;  %v3022_v49 = vld [vmem:[%s4405_s1 + $0x424] sm:$0xf] }
  0x56   : > { %1654 = vmatpush.bf16.msra.mxu0 %v2175_v60  ;;  %v2415_v60 = vor.u32 %v2965_v50, %v2412_v51  ;;  %v2115_v3 = vor.u32 %v2890_v53, %v2112_v54  ;;  %v2844_v40 = vld [vmem:[%s4405_s1 + $0x5c4] sm:$0xf0]  ;;  %v2655_v42 = vor.u32 %v3025_v33, %v2652_v35  ;;  %v2640_v51 = vld [vmem:[%s4405_s1 + $0x42c] sm:$0xf0]  ;;  %v3070_v54 = vld [vmem:[%s4405_s1 + $0x5a4] sm:$0xf] }
  0x57   : > { %1668 = vmatpush.bf16.msra.mxu1 %v2271_v61  ;;  %v2304_v61 = vld [vmem:[%s4405_s1 + $0x18c] sm:$0xf0]  ;;  %v2643_v57 = vor.u32 %v3022_v49, %v2640_v51  ;;  %v3043_v0 = vld [vmem:[%s4405_s1 + $0x4cc] sm:$0xf]  ;;  %v2724_v1 = vld [vmem:[%s4405_s1 + $0x4d4] sm:$0xf0] }
  0x58   : > { %1682 = vmatpush.bf16.msra.mxu2 %v2367_v62  ;;  %v2962_v62 = vld [vmem:[%s4405_s1 + $0x244] sm:$0xf]  ;;  %v2736_v53 = vld [vmem:[%s4405_s1 + $0x4ec] sm:$0xf0]  ;;  %v2808_v16 = vld [vmem:[%s4405_s1 + $0x57c] sm:$0xf0] }
  0x59   : > { %1696 = vmatpush.bf16.msra.mxu3 %v2463_v2  ;;  %v3031_v2 = vld [vmem:[%s4405_s1 + $0x46c] sm:$0xf]  ;;  %v2403_v11 = vor.u32 %v2962_v62, %v2400_v63  ;;  %v2628_v63 = vld [vmem:[%s4405_s1 + $0x414] sm:$0xf0]  ;;  %v2989_v22 = vld [vmem:[%s4405_s1 + $0x31c] sm:$0xf] }
  0x5a   : > { %1655 = vmatpush.bf16.msra.mxu0 %v2163_v8  ;;  %v2307_v8 = vor.u32 %v2938_v59, %v2304_v61  ;;  %v2679_v13 = vor.u32 %v3031_v2, %v2676_v4  ;;  %v2995_v59 = vld [vmem:[%s4405_s1 + $0x34c] sm:$0xf]  ;;  %v2796_v31 = vld [vmem:[%s4405_s1 + $0x564] sm:$0xf0]  ;;  %v2986_v33 = vld [vmem:[%s4405_s1 + $0x304] sm:$0xf] }
  0x5b   : > { %1669 = vmatpush.bf16.msra.mxu1 %v2259_v9  ;;  %v3079_v9 = vld [vmem:[%s4405_s1 + $0x5ec] sm:$0xf]  ;;  %v2913_v49 = vld [vmem:[%s4405_s1 + $0xb8] sm:$0xf0] }
  0x5c   : > { %1683 = vmatpush.bf16.msra.mxu2 %v2355_v10  ;;  %v2868_v10 = vld [vmem:[%s4405_s1 + $0x5f4] sm:$0xf0]  ;;  %v3019_v61 = vld [vmem:[%s4405_s1 + $0x40c] sm:$0xf] }
  0x5d   : > { %1697 = vmatpush.bf16.msra.mxu3 %v2451_v14  ;;  %v2775_v14 = vor.u32 %v3055_v5, %v2772_v6  ;;  %v2871_v19 = vor.u32 %v3079_v9, %v2868_v10  ;;  %v3067_v2 = vld [vmem:[%s4405_s1 + $0x58c] sm:$0xf]  ;;  %v2631_v5 = vor.u32 %v3019_v61, %v2628_v63  ;;  %v2727_v6 = vor.u32 %v3043_v0, %v2724_v1  ;;  %v3016_v9 = vld [vmem:[%s4405_s1 + $0x3f4] sm:$0xf]  ;;  %v2190_v63 = vld [vmem:[%s4405_s1 + $0x98] sm:$0xf] }
  0x5e   : > { %1656 = vmatpush.bf16.msra.mxu0 %v2151_v23  ;;  %v3052_v23 = vld [vmem:[%s4405_s1 + $0x514] sm:$0xf]  ;;  %v2910_v0 = vld [vmem:[%s4405_s1 + $0xa0] sm:$0xf0]  ;;  %v2286_v1 = vld [vmem:[%s4405_s1 + $0x158] sm:$0xf] }
  0x5f   : > { %1670 = vmatpush.bf16.msra.mxu1 %v2247_v24  ;;  %v2760_v24 = vld [vmem:[%s4405_s1 + $0x51c] sm:$0xf0] }
  0x60   : > { %1684 = vmatpush.bf16.msra.mxu2 %v2343_v25  ;;  %v3076_v25 = vld [vmem:[%s4405_s1 + $0x5d4] sm:$0xf] }
  0x61   : > { %1698 = vmatpush.bf16.msra.mxu3 %v2439_v30  ;;  %v2763_v30 = vor.u32 %v3052_v23, %v2760_v24  ;;  %v2859_v34 = vor.u32 %v3076_v25, %v2856_v26  ;;  %v2508_v23 = vld [vmem:[%s4405_s1 + $0x324] sm:$0xf0]  ;;  %v3013_v24 = vld [vmem:[%s4405_s1 + $0x3dc] sm:$0xf] }
  0x62   : > { %1657 = vmatpush.bf16.msra.mxu0 %v2139_v36  ;;  %v3049_v36 = vld [vmem:[%s4405_s1 + $0x4fc] sm:$0xf]  ;;  %v2604_v26 = vld [vmem:[%s4405_s1 + $0x3e4] sm:$0xf0]  ;;  %v2511_v32 = vor.u32 %v2989_v22, %v2508_v23  ;;  %v2979_v22 = vld [vmem:[%s4405_s1 + $0x2c8] sm:$0xf0] }
  0x63   : > { %1671 = vmatpush.bf16.msra.mxu1 %v2235_v37  ;;  %v2748_v37 = vld [vmem:[%s4405_s1 + $0x504] sm:$0xf0]  ;;  %v2607_v35 = vor.u32 %v3013_v24, %v2604_v26 }
  0x64   : > { %1685 = vmatpush.bf16.msra.mxu2 %v2331_v38  ;;  %v3073_v38 = vld [vmem:[%s4405_s1 + $0x5bc] sm:$0xf]  ;;  %v2166_v26 = vld [vmem:[%s4405_s1 + $0x68] sm:$0xf] }
  0x65   : > { %1699 = vmatpush.bf16.msra.mxu3 %v2427_v45  ;;  %v2751_v45 = vor.u32 %v3049_v36, %v2748_v37  ;;  %v2847_v50 = vor.u32 %v3073_v38, %v2844_v40  ;;  %v3010_v37 = vld [vmem:[%s4405_s1 + $0x3c4] sm:$0xf]  ;;  %v2592_v38 = vld [vmem:[%s4405_s1 + $0x3cc] sm:$0xf0] }
  0x66   : > { %1658 = vmatpush.bf16.msra.mxu0 %v2127_v52  ;;  %v3046_v52 = vld [vmem:[%s4405_s1 + $0x4e4] sm:$0xf] }
  0x67   : > { %1672 = vmatpush.bf16.msra.mxu1 %v2223_v55  ;;  %v2832_v55 = vld [vmem:[%s4405_s1 + $0x5ac] sm:$0xf0]  ;;  %v2739_v58 = vor.u32 %v3046_v52, %v2736_v53  ;;  %v3034_v40 = vld [vmem:[%s4405_s1 + $0x484] sm:$0xf]  ;;  %v2937_v52 = vld [vmem:[%s4405_s1 + $0x178] sm:$0xf0] }
  0x68   : > { %1686 = vmatpush.bf16.msra.mxu2 %v2319_v56  ;;  %v2547_v56 = vor.u32 %v2998_v46, %v2544_v48  ;;  %v2835_v62 = vor.u32 %v3070_v54, %v2832_v55  ;;  %v2784_v46 = vld [vmem:[%s4405_s1 + $0x54c] sm:$0xf0]  ;;  %v2961_v54 = vld [vmem:[%s4405_s1 + $0x238] sm:$0xf0]  ;;  %v2595_v55 = vor.u32 %v3010_v37, %v2592_v38 }
  0x69   : > { %1700 = vmatpush.bf16.msra.mxu3 %v2415_v60  ;;  %v2532_v60 = vld [vmem:[%s4405_s1 + $0x354] sm:$0xf0]  ;;  %v2202_v48 = vld [vmem:[%s4405_s1 + $0xb0] sm:$0xf] }
  0x6a   : > { %1659 = vmatpush.bf16.msra.mxu0 %v2115_v3  ;;  %v2820_v3 = vld [vmem:[%s4405_s1 + $0x594] sm:$0xf0]  ;;  %v2535_v4 = vor.u32 %v2995_v59, %v2532_v60  ;;  %v2394_v53 = vld [vmem:[%s4405_s1 + $0x230] sm:$0xf]  ;;  %v2203_v60 = vor.u32 %v2913_v49, %v2202_v48  ;;  %v2949_v49 = vld [vmem:[%s4405_s1 + $0x1d8] sm:$0xf0] }
  0x6b   : > { %1673 = vmatpush.bf16.msra.mxu1 %v2211_v7  ;;  %v2992_v7 = vld [vmem:[%s4405_s1 + $0x334] sm:$0xf]  ;;  %v2823_v10 = vor.u32 %v3067_v2, %v2820_v3  ;;  %v2934_v3 = vld [vmem:[%s4405_s1 + $0x160] sm:$0xf0]  ;;  %v2346_v48 = vld [vmem:[%s4405_s1 + $0x1d0] sm:$0xf] }
  0x6c   : > { %1687 = vmatpush.bf16.msra.mxu2 %v2307_v8  ;;  %v2520_v8 = vld [vmem:[%s4405_s1 + $0x33c] sm:$0xf0] }
  0x6d   : > { %1701 = vmatpush.bf16.msra.mxu3 %v2403_v11  ;;  %1660 = vmatmul.bf16.vlgmr.msra.gmra.mxu0 %v3441_v15  ;;  %v2616_v11 = vld [vmem:[%s4405_s1 + $0x3fc] sm:$0xf0]  ;;  %v2523_v17 = vor.u32 %v2992_v7, %v2520_v8  ;;  %v2982_v7 = vld [vmem:[%s4405_s1 + $0x2e0] sm:$0xf0]  ;;  %v2191_v8 = vor.u32 %v2910_v0, %v2190_v63 }
  0x6e   : > { %1708 = vmatpush.bf16.msrb.mxu0 %v2583_v12  ;;  %1674 = vmatmul.bf16.vlgmr.msra.gmra.mxu1 %v3448_v21  ;;  %v3040_v12 = vld [vmem:[%s4405_s1 + $0x4b4] sm:$0xf]  ;;  %v2619_v18 = vor.u32 %v3016_v9, %v2616_v11  ;;  %v2287_v9 = vor.u32 %v2934_v3, %v2286_v1  ;;  %v2178_v11 = vld [vmem:[%s4405_s1 + $0x80] sm:$0xf]  ;;  %v2970_v63 = vld [vmem:[%s4405_s1 + $0x280] sm:$0xf0] }
  0x6f   : > { %1722 = vmatpush.bf16.msrb.mxu1 %v2679_v13  ;;  %1688 = vmatmul.bf16.vlgmr.msra.gmra.mxu2 %v3446_v20  ;;  %v2712_v13 = vld [vmem:[%s4405_s1 + $0x4bc] sm:$0xf0] }
  0x70   : > { %1736 = vmatpush.bf16.msrb.mxu2 %v2775_v14  ;;  %1702 = vmatmul.bf16.vlgmr.msra.gmra.mxu3 %v3461_v29  ;;  %v3064_v14 = vld [vmem:[%s4405_s1 + $0x574] sm:$0xf]  ;;  %v2130_v3 = vld [vmem:[%s4405_s1 + $0x20] sm:$0xf] }
  0x71   : > { %1750 = vmatpush.bf16.msrb.mxu3 %v2871_v19  ;;  %v2715_v19 = vor.u32 %v3040_v12, %v2712_v13  ;;  %v2811_v25 = vor.u32 %v3064_v14, %v2808_v16  ;;  %v2907_v12 = vld [vmem:[%s4405_s1 + $0x88] sm:$0xf0]  ;;  %v2274_v13 = vld [vmem:[%s4405_s1 + $0x140] sm:$0xf] }
  0x72   : > { %1709 = vmatpush.bf16.msrb.mxu0 %v2571_v27  ;;  %v3037_v27 = vld [vmem:[%s4405_s1 + $0x49c] sm:$0xf]  ;;  %v2931_v16 = vld [vmem:[%s4405_s1 + $0x148] sm:$0xf0]  ;;  %v2179_v23 = vor.u32 %v2907_v12, %v2178_v11 }
  0x73   : > { %1723 = vmatpush.bf16.msrb.mxu1 %v2667_v28  ;;  %v2700_v28 = vld [vmem:[%s4405_s1 + $0x4a4] sm:$0xf0]  ;;  %v2275_v24 = vor.u32 %v2931_v16, %v2274_v13  ;;  %v2967_v11 = vld [vmem:[%s4405_s1 + $0x268] sm:$0xf0] }
  0x74   : > { %1737 = vmatpush.bf16.msrb.mxu2 %v2763_v30  ;;  %v3061_v30 = vld [vmem:[%s4405_s1 + $0x55c] sm:$0xf]  ;;  %v2703_v36 = vor.u32 %v3037_v27, %v2700_v28  ;;  %v2904_v27 = vld [vmem:[%s4405_s1 + $0x70] sm:$0xf0]  ;;  %v2262_v28 = vld [vmem:[%s4405_s1 + $0x128] sm:$0xf] }
  0x75   : > { %1751 = vmatpush.bf16.msrb.mxu3 %v2859_v34  ;;  %v2496_v34 = vld [vmem:[%s4405_s1 + $0x30c] sm:$0xf0]  ;;  %v2118_v13 = vld [vmem:[%s4405_s1 + $0x8] sm:$0xf] }
  0x76   : > { %1710 = vmatpush.bf16.msrb.mxu0 %v2559_v41  ;;  %v2799_v41 = vor.u32 %v3061_v30, %v2796_v31  ;;  %v2499_v51 = vor.u32 %v2986_v33, %v2496_v34  ;;  %v2928_v31 = vld [vmem:[%s4405_s1 + $0x130] sm:$0xf0]  ;;  %v2454_v34 = vld [vmem:[%s4405_s1 + $0x2a8] sm:$0xf] }
  0x77   : > { %1724 = vmatpush.bf16.msrb.mxu1 %v2655_v42  ;;  %v2688_v42 = vld [vmem:[%s4405_s1 + $0x48c] sm:$0xf0]  ;;  %v2952_v33 = vld [vmem:[%s4405_s1 + $0x1f0] sm:$0xf0]  ;;  %v2263_v37 = vor.u32 %v2928_v31, %v2262_v28  ;;  %v3009_v28 = vld [vmem:[%s4405_s1 + $0x3b8] sm:$0xf0] }
  0x78   : > { %1738 = vmatpush.bf16.msrb.mxu2 %v2751_v45  ;;  %v3058_v45 = vld [vmem:[%s4405_s1 + $0x544] sm:$0xf] }
  0x79   : > { %1752 = vmatpush.bf16.msrb.mxu3 %v2847_v50  ;;  %v2298_v50 = vld [vmem:[%s4405_s1 + $0x170] sm:$0xf]  ;;  %v2787_v59 = vor.u32 %v3058_v45, %v2784_v46  ;;  %v2925_v46 = vld [vmem:[%s4405_s1 + $0x118] sm:$0xf0] }
  0x7a   : > { %1711 = vmatpush.bf16.msrb.mxu0 %v2547_v56  ;;  %v2691_v56 = vor.u32 %v3034_v40, %v2688_v42  ;;  %v2299_v61 = vor.u32 %v2937_v52, %v2298_v50  ;;  %v2154_v40 = vld [vmem:[%s4405_s1 + $0x50] sm:$0xf] }
  0x7b   : > { %1725 = vmatpush.bf16.msrb.mxu1 %v2643_v57  ;;  %v2490_v57 = vld [vmem:[%s4405_s1 + $0x2f0] sm:$0xf] }
  0x7c   : > { %1739 = vmatpush.bf16.msrb.mxu2 %v2739_v58  ;;  %v2985_v58 = vld [vmem:[%s4405_s1 + $0x2f8] sm:$0xf0]  ;;  %v2250_v42 = vld [vmem:[%s4405_s1 + $0x110] sm:$0xf] }
  0x7d   : > { %1753 = vmatpush.bf16.msrb.mxu3 %v2835_v62  ;;  %v2395_v62 = vor.u32 %v2961_v54, %v2394_v53  ;;  %v2491_v2 = vor.u32 %v2985_v58, %v2490_v57  ;;  %v2442_v50 = vld [vmem:[%s4405_s1 + $0x290] sm:$0xf]  ;;  %v2251_v53 = vor.u32 %v2925_v46, %v2250_v42  ;;  %v2347_v54 = vor.u32 %v2949_v49, %v2346_v48  ;;  %v2238_v57 = vld [vmem:[%s4405_s1 + $0xf8] sm:$0xf]  ;;  %v3006_v48 = vld [vmem:[%s4405_s1 + $0x3a0] sm:$0xf0] }
  0x7e   : > { %1712 = vmatpush.bf16.msrb.mxu0 %v2535_v4  ;;  %v2382_v4 = vld [vmem:[%s4405_s1 + $0x218] sm:$0xf] }
  0x7f   : > { %1726 = vmatpush.bf16.msrb.mxu1 %v2631_v5  ;;  %v2958_v5 = vld [vmem:[%s4405_s1 + $0x220] sm:$0xf0]  ;;  %v2574_v46 = vld [vmem:[%s4405_s1 + $0x398] sm:$0xf] }
  0x80   : > { %1740 = vmatpush.bf16.msrb.mxu2 %v2727_v6  ;;  %v2478_v6 = vld [vmem:[%s4405_s1 + $0x2d8] sm:$0xf] }
  0x81   : > { %1754 = vmatpush.bf16.msrb.mxu3 %v2823_v10  ;;  %v2383_v10 = vor.u32 %v2958_v5, %v2382_v4  ;;  %v2479_v14 = vor.u32 %v2982_v7, %v2478_v6  ;;  %v2895_v4 = vld [vmem:[%s4405_s1 + $0x28] sm:$0xf0]  ;;  %v2226_v5 = vld [vmem:[%s4405_s1 + $0xe0] sm:$0xf]  ;;  %v2670_v49 = vld [vmem:[%s4405_s1 + $0x458] sm:$0xf] }
  0x82   : > { %1713 = vmatpush.bf16.msrb.mxu0 %v2523_v17  ;;  %v2370_v17 = vld [vmem:[%s4405_s1 + $0x200] sm:$0xf]  ;;  %v2919_v7 = vld [vmem:[%s4405_s1 + $0xe8] sm:$0xf0]  ;;  %v2131_v12 = vor.u32 %v2895_v4, %v2130_v3 }
  0x83   : > { %1727 = vmatpush.bf16.msrb.mxu1 %v2619_v18  ;;  %v2955_v18 = vld [vmem:[%s4405_s1 + $0x208] sm:$0xf0]  ;;  %v2227_v16 = vor.u32 %v2919_v7, %v2226_v5  ;;  %v3000_v7 = vld [vmem:[%s4405_s1 + $0x370] sm:$0xf0] }
  0x84   : > { %1741 = vmatpush.bf16.msrb.mxu2 %v2715_v19  ;;  %v2466_v19 = vld [vmem:[%s4405_s1 + $0x2c0] sm:$0xf] }
  0x85   : > { %1755 = vmatpush.bf16.msrb.mxu3 %v2811_v25  ;;  %v2371_v25 = vor.u32 %v2955_v18, %v2370_v17  ;;  %v2467_v30 = vor.u32 %v2979_v22, %v2466_v19  ;;  %v2214_v18 = vld [vmem:[%s4405_s1 + $0xc8] sm:$0xf]  ;;  %v2916_v19 = vld [vmem:[%s4405_s1 + $0xd0] sm:$0xf0] }
  0x86   : > { %1714 = vmatpush.bf16.msrb.mxu0 %v2511_v32  ;;  %v2358_v32 = vld [vmem:[%s4405_s1 + $0x1e8] sm:$0xf] }
  0x87   : > { %1728 = vmatpush.bf16.msrb.mxu1 %v2607_v35  ;;  %v2976_v35 = vld [vmem:[%s4405_s1 + $0x2b0] sm:$0xf0]  ;;  %v2359_v38 = vor.u32 %v2952_v33, %v2358_v32  ;;  %v2310_v22 = vld [vmem:[%s4405_s1 + $0x188] sm:$0xf]  ;;  %v3033_v32 = vld [vmem:[%s4405_s1 + $0x478] sm:$0xf0] }
  0x88   : > { %1742 = vmatpush.bf16.msrb.mxu2 %v2703_v36  ;;  %v2167_v36 = vor.u32 %v2904_v27, %v2166_v26  ;;  %v2455_v45 = vor.u32 %v2976_v35, %v2454_v34  ;;  %v2964_v26 = vld [vmem:[%s4405_s1 + $0x250] sm:$0xf0]  ;;  %v2586_v27 = vld [vmem:[%s4405_s1 + $0x3b0] sm:$0xf]  ;;  %v3057_v34 = vld [vmem:[%s4405_s1 + $0x538] sm:$0xf0]  ;;  %v2215_v35 = vor.u32 %v2916_v19, %v2214_v18 }
  0x89   : > { %1756 = vmatpush.bf16.msrb.mxu3 %v2799_v41  ;;  %v2901_v41 = vld [vmem:[%s4405_s1 + $0x58] sm:$0xf0]  ;;  %v2778_v33 = vld [vmem:[%s4405_s1 + $0x530] sm:$0xf] }
  0x8a   : > { %1715 = vmatpush.bf16.msrb.mxu0 %v2499_v51  ;;  %v2973_v51 = vld [vmem:[%s4405_s1 + $0x298] sm:$0xf0]  ;;  %v2155_v52 = vor.u32 %v2901_v41, %v2154_v40  ;;  %v2587_v41 = vor.u32 %v3009_v28, %v2586_v27  ;;  %v2634_v18 = vld [vmem:[%s4405_s1 + $0x410] sm:$0xf] }
  0x8b   : > { %1729 = vmatpush.bf16.msrb.mxu1 %v2595_v55  ;;  %v2142_v55 = vld [vmem:[%s4405_s1 + $0x38] sm:$0xf]  ;;  %v2443_v58 = vor.u32 %v2973_v51, %v2442_v50  ;;  %v3030_v51 = vld [vmem:[%s4405_s1 + $0x460] sm:$0xf0]  ;;  %v3069_v27 = vld [vmem:[%s4405_s1 + $0x598] sm:$0xf0] }
  0x8c   : > { %1743 = vmatpush.bf16.msrb.mxu2 %v2691_v56  ;;  %v2898_v56 = vld [vmem:[%s4405_s1 + $0x40] sm:$0xf0] }
  0x8d   : > { %1757 = vmatpush.bf16.msrb.mxu3 %v2787_v59  ;;  %1716 = vmatmul.bf16.vlgmr.msrb.gmra.mxu0 %v3595_v39  ;;  %v2922_v59 = vld [vmem:[%s4405_s1 + $0x100] sm:$0xf0]  ;;  %v2143_v0 = vor.u32 %v2898_v56, %v2142_v55  ;;  %v2575_v56 = vor.u32 %v3006_v48, %v2574_v46 }
  0x8e   : > { %1764 = vmatpush.bf16.msra.mxu0 %v2203_v60  ;;  %1730 = vmatmul.bf16.vlgmr.msrb.gmra.mxu1 %v3608_v44  ;;  %v2334_v60 = vld [vmem:[%s4405_s1 + $0x1b8] sm:$0xf]  ;;  %v2239_v1 = vor.u32 %v2922_v59, %v2238_v57  ;;  %v3078_v55 = vld [vmem:[%s4405_s1 + $0x5e0] sm:$0xf0]  ;;  %v2671_v57 = vor.u32 %v3030_v51, %v2670_v49  ;;  %v2562_v59 = vld [vmem:[%s4405_s1 + $0x380] sm:$0xf] }
  0x8f   : > { %1778 = vmatpush.bf16.msra.mxu1 %v2299_v61  ;;  %1744 = vmatmul.bf16.vlgmr.msrb.gmra.mxu2 %v3606_v43  ;;  %v2946_v61 = vld [vmem:[%s4405_s1 + $0x1c0] sm:$0xf0] }
  0x90   : > { %1792 = vmatpush.bf16.msra.mxu2 %v2395_v62  ;;  %1758 = vmatmul.bf16.vlgmr.msrb.gmra.mxu3 %v3616_v47  ;;  %v2430_v62 = vld [vmem:[%s4405_s1 + $0x278] sm:$0xf]  ;;  %v4270_v19 = vld [vmem:[%s4406_s2] ss:$4 sm:$0x7] }
  0x91   : > { %1806 = vmatpush.bf16.msra.mxu3 %v2491_v2  ;;  %v2335_v2 = vor.u32 %v2946_v61, %v2334_v60  ;;  %v2431_v6 = vor.u32 %v2970_v63, %v2430_v62  ;;  %v3003_v60 = vld [vmem:[%s4405_s1 + $0x388] sm:$0xf0]  ;;  %v2658_v61 = vld [vmem:[%s4405_s1 + $0x440] sm:$0xf] }
  0x92   : > { %1765 = vmatpush.bf16.msra.mxu0 %v2191_v8  ;;  %v2322_v8 = vld [vmem:[%s4405_s1 + $0x1a0] sm:$0xf]  ;;  %v3027_v63 = vld [vmem:[%s4405_s1 + $0x448] sm:$0xf0]  ;;  %v2563_v3 = vor.u32 %v3003_v60, %v2562_v59 }
  0x93   : > { %1779 = vmatpush.bf16.msra.mxu1 %v2287_v9  ;;  %v2943_v9 = vld [vmem:[%s4405_s1 + $0x1a8] sm:$0xf0]  ;;  %v2659_v4 = vor.u32 %v3027_v63, %v2658_v61  ;;  %v2802_v60 = vld [vmem:[%s4405_s1 + $0x560] sm:$0xf] }
  0x94   : > { %1793 = vmatpush.bf16.msra.mxu2 %v2383_v10  ;;  %v2418_v10 = vld [vmem:[%s4405_s1 + $0x260] sm:$0xf]  ;;  %v2323_v17 = vor.u32 %v2943_v9, %v2322_v8  ;;  %v2742_v8 = vld [vmem:[%s4405_s1 + $0x4e8] sm:$0xf]  ;;  %v3048_v9 = vld [vmem:[%s4405_s1 + $0x4f0] sm:$0xf0] }
  0x95   : > { %1807 = vmatpush.bf16.msra.mxu3 %v2479_v14  ;;  %v2892_v14 = vld [vmem:[%s4405_s1 + $0x10] sm:$0xf0]  ;;  %v3063_v61 = vld [vmem:[%s4405_s1 + $0x568] sm:$0xf0] }
  0x96   : > { %1766 = vmatpush.bf16.msra.mxu0 %v2179_v23  ;;  %v2419_v23 = vor.u32 %v2967_v11, %v2418_v10  ;;  %v2119_v31 = vor.u32 %v2892_v14, %v2118_v13  ;;  %v2838_v10 = vld [vmem:[%s4405_s1 + $0x5a8] sm:$0xf]  ;;  %v3072_v11 = vld [vmem:[%s4405_s1 + $0x5b0] sm:$0xf0]  ;;  %v2538_v13 = vld [vmem:[%s4405_s1 + $0x350] sm:$0xf] }
  0x97   : > { %1780 = vmatpush.bf16.msra.mxu1 %v2275_v24  ;;  %v2940_v24 = vld [vmem:[%s4405_s1 + $0x190] sm:$0xf0]  ;;  %v2997_v14 = vld [vmem:[%s4405_s1 + $0x358] sm:$0xf0] }
  0x98   : > { %1794 = vmatpush.bf16.msra.mxu2 %v2371_v25  ;;  %v2406_v25 = vld [vmem:[%s4405_s1 + $0x248] sm:$0xf]  ;;  %v2539_v28 = vor.u32 %v2997_v14, %v2538_v13 }
  0x99   : > { %1808 = vmatpush.bf16.msra.mxu3 %v2467_v30  ;;  %v2682_v30 = vld [vmem:[%s4405_s1 + $0x470] sm:$0xf]  ;;  %v2407_v40 = vor.u32 %v2964_v26, %v2406_v25  ;;  %v3045_v25 = vld [vmem:[%s4405_s1 + $0x4d8] sm:$0xf0] }
  0x9a   : > { %1767 = vmatpush.bf16.msra.mxu0 %v2167_v36  ;;  %v2311_v36 = vor.u32 %v2940_v24, %v2310_v22  ;;  %v2683_v42 = vor.u32 %v3033_v32, %v2682_v30  ;;  %v2839_v22 = vor.u32 %v3072_v11, %v2838_v10  ;;  %v2730_v24 = vld [vmem:[%s4405_s1 + $0x4d0] sm:$0xf]  ;;  %v470_v30 = vperm.slane %v4270_v19, 0 }
  0x9b   : > { %1781 = vmatpush.bf16.msra.mxu1 %v2263_v37  ;;  %v2874_v37 = vld [vmem:[%s4405_s1 + $0x5f0] sm:$0xf]  ;;  %v2731_v32 = vor.u32 %v3045_v25, %v2730_v24 }
  0x9c   : > { %1795 = vmatpush.bf16.msra.mxu2 %v2359_v38  ;;  %v3081_v38 = vld [vmem:[%s4405_s1 + $0x5f8] sm:$0xf0]  ;;  %v2826_v26 = vld [vmem:[%s4405_s1 + $0x590] sm:$0xf] }
  0x9d   : > { %1809 = vmatpush.bf16.msra.mxu3 %v2455_v45  ;;  %v2779_v45 = vor.u32 %v3057_v34, %v2778_v33  ;;  %v2875_v50 = vor.u32 %v3081_v38, %v2874_v37  ;;  %v2526_v33 = vld [vmem:[%s4405_s1 + $0x338] sm:$0xf]  ;;  %v2994_v34 = vld [vmem:[%s4405_s1 + $0x340] sm:$0xf0] }
  0x9e   : > { %1768 = vmatpush.bf16.msra.mxu0 %v2155_v52  ;;  %v2766_v52 = vld [vmem:[%s4405_s1 + $0x518] sm:$0xf]  ;;  %v3018_v37 = vld [vmem:[%s4405_s1 + $0x400] sm:$0xf0]  ;;  %v2527_v46 = vor.u32 %v2994_v34, %v2526_v33 }
  0x9f   : > { %1782 = vmatpush.bf16.msra.mxu1 %v2251_v53  ;;  %v3054_v53 = vld [vmem:[%s4405_s1 + $0x520] sm:$0xf0]  ;;  %v2718_v38 = vld [vmem:[%s4405_s1 + $0x4b8] sm:$0xf] }
  0xa0   : > { %1796 = vmatpush.bf16.msra.mxu2 %v2347_v54  ;;  %v2862_v54 = vld [vmem:[%s4405_s1 + $0x5d8] sm:$0xf] }
  0xa1   : > { %1810 = vmatpush.bf16.msra.mxu3 %v2443_v58  ;;  %v2767_v58 = vor.u32 %v3054_v53, %v2766_v52  ;;  %v2863_v62 = vor.u32 %v3078_v55, %v2862_v54  ;;  %v2514_v52 = vld [vmem:[%s4405_s1 + $0x320] sm:$0xf]  ;;  %v2991_v53 = vld [vmem:[%s4405_s1 + $0x328] sm:$0xf0] }
  0xa2   : > { %1769 = vmatpush.bf16.msra.mxu0 %v2143_v0  ;;  %v2754_v0 = vld [vmem:[%s4405_s1 + $0x500] sm:$0xf] }
  0xa3   : > { %1783 = vmatpush.bf16.msra.mxu1 %v2239_v1  ;;  %v3051_v1 = vld [vmem:[%s4405_s1 + $0x508] sm:$0xf0]  ;;  %v2610_v54 = vld [vmem:[%s4405_s1 + $0x3e0] sm:$0xf] }
  0xa4   : > { %1797 = vmatpush.bf16.msra.mxu2 %v2335_v2  ;;  %v2850_v2 = vld [vmem:[%s4405_s1 + $0x5c0] sm:$0xf]  ;;  %v2755_v5 = vor.u32 %v3051_v1, %v2754_v0  ;;  %v2502_v1 = vld [vmem:[%s4405_s1 + $0x308] sm:$0xf] }
  0xa5   : > { %1811 = vmatpush.bf16.msra.mxu3 %v2431_v6  ;;  %v2550_v6 = vld [vmem:[%s4405_s1 + $0x368] sm:$0xf] }
  0xa6   : > { %1770 = vmatpush.bf16.msra.mxu0 %v2131_v12  ;;  %v2551_v12 = vor.u32 %v3000_v7, %v2550_v6  ;;  %v3036_v6 = vld [vmem:[%s4405_s1 + $0x490] sm:$0xf0] }
  0xa7   : > { %1784 = vmatpush.bf16.msra.mxu1 %v2227_v16 }
  0xa8   : > { %1798 = vmatpush.bf16.msra.mxu2 %v2323_v17  ;;  %v2743_v17 = vor.u32 %v3048_v9, %v2742_v8 }
  0xa9   : > { %1812 = vmatpush.bf16.msra.mxu3 %v2419_v23  ;;  %v3021_v23 = vld [vmem:[%s4405_s1 + $0x418] sm:$0xf0] }
  0xaa   : > { %1771 = vmatpush.bf16.msra.mxu0 %v2119_v31  ;;  %v2635_v31 = vor.u32 %v3021_v23, %v2634_v18 }
  0xab   : > { %1785 = vmatpush.bf16.msra.mxu1 %v2215_v35  ;;  %v2622_v35 = vld [vmem:[%s4405_s1 + $0x3f8] sm:$0xf] }
  0xac   : > { %1799 = vmatpush.bf16.msra.mxu2 %v2311_v36  ;;  %v2827_v36 = vor.u32 %v3069_v27, %v2826_v26 }
  0xad   : > { %1813 = vmatpush.bf16.msra.mxu3 %v2407_v40  ;;  %1772 = vmatmul.bf16.vlgmr.msra.gmra.mxu0 %v3441_v15  ;;  %v2646_v15 = vld [vmem:[%s4405_s1 + $0x428] sm:$0xf]  ;;  %v3042_v40 = vld [vmem:[%s4405_s1 + $0x4c0] sm:$0xf0] }
  0xae   : > { %1820 = vmatpush.bf16.msrb.mxu0 %v2587_v41  ;;  %1786 = vmatmul.bf16.vlgmr.msra.gmra.mxu1 %v3448_v21  ;;  %v3024_v21 = vld [vmem:[%s4405_s1 + $0x430] sm:$0xf0]  ;;  %v2814_v41 = vld [vmem:[%s4405_s1 + $0x578] sm:$0xf]  ;;  %v1563_v49 = vpop.f32.mrf.mxu1  ;;  %v2719_v51 = vor.u32 %v3042_v40, %v2718_v38 }
  0xaf   : > { %1834 = vmatpush.bf16.msrb.mxu1 %v2683_v42  ;;  %1800 = vmatmul.bf16.vlgmr.msra.gmra.mxu2 %v3446_v20  ;;  %v3075_v20 = vld [vmem:[%s4405_s1 + $0x5c8] sm:$0xf0]  ;;  %v2647_v16 = vor.u32 %v3024_v21, %v2646_v15  ;;  %v3066_v42 = vld [vmem:[%s4405_s1 + $0x580] sm:$0xf0]  ;;  %v2790_v15 = vld [vmem:[%s4405_s1 + $0x548] sm:$0xf] }
  0xb0   : > { %1848 = vmatpush.bf16.msrb.mxu2 %v2779_v45  ;;  %1814 = vmatmul.bf16.vlgmr.msra.gmra.mxu3 %v3461_v29  ;;  %v2851_v29 = vor.u32 %v3075_v20, %v2850_v2  ;;  %v1549_v45 = vpop.f32.mrf.mxu0  ;;  %v2815_v55 = vor.u32 %v3066_v42, %v2814_v41  ;;  %v2988_v2 = vld [vmem:[%s4405_s1 + $0x310] sm:$0xf0]  ;;  %v2598_v20 = vld [vmem:[%s4405_s1 + $0x3c8] sm:$0xf] }
  0xb1   : > { %1862 = vmatpush.bf16.msrb.mxu3 %v2875_v50  ;;  %v1550_v48 = vadd.f32 %v1549_v45, %v470_v30  ;;  %v2623_v50 = vor.u32 %v3018_v37, %v2622_v35  ;;  %v2503_v10 = vor.u32 %v2988_v2, %v2502_v1 }
  0xb2   : > { %1821 = vmatpush.bf16.msrb.mxu0 %v2575_v56  ;;  %v3015_v56 = vld [vmem:[%s4405_s1 + $0x3e8] sm:$0xf0]  ;;  %v1577_v7 = vpop.f32.mrf.mxu2 }
  0xb3   : > { %1835 = vmatpush.bf16.msrb.mxu1 %v2671_v57  ;;  %v2706_v57 = vld [vmem:[%s4405_s1 + $0x4a0] sm:$0xf]  ;;  %v1564_v59 = vadd.f32 %v1563_v49, %v1550_v48  ;;  %v2611_v63 = vor.u32 %v3015_v56, %v2610_v54 }
  0xb4   : > { %1849 = vmatpush.bf16.msrb.mxu2 %v2767_v58  ;;  %v3039_v58 = vld [vmem:[%s4405_s1 + $0x4a8] sm:$0xf0] }
  0xb5   : > { %1863 = vmatpush.bf16.msrb.mxu3 %v2863_v62  ;;  %v2515_v62 = vor.u32 %v2991_v53, %v2514_v52  ;;  %v2707_v0 = vor.u32 %v3039_v58, %v2706_v57  ;;  %v1578_v21 = vadd.f32 %v1577_v7, %v1564_v59  ;;  %v1591_v9 = vpop.f32.mrf.mxu3 }
  0xb6   : > { %1822 = vmatpush.bf16.msrb.mxu0 %v2563_v3  ;;  %v2803_v3 = vor.u32 %v3063_v61, %v2802_v60 }
  0xb7   : > { %1836 = vmatpush.bf16.msrb.mxu1 %v2659_v4  ;;  %v3012_v4 = vld [vmem:[%s4405_s1 + $0x3d0] sm:$0xf0]  ;;  %v1592_v14 = vadd.f32 %v1591_v9, %v1578_v21 }
  0xb8   : > { %1850 = vmatpush.bf16.msrb.mxu2 %v2755_v5  ;;  %v2694_v5 = vld [vmem:[%s4405_s1 + $0x488] sm:$0xf]  ;;  %v1551_v8 = vpop.f32.mrf.mxu0 }
  0xb9   : > { %1864 = vmatpush.bf16.msrb.mxu3 %v2851_v29  ;;  %v3060_v29 = vld [vmem:[%s4405_s1 + $0x550] sm:$0xf0]  ;;  %v1552_v11 = vadd.f32 %v1551_v8, %v470_v30  ;;  %v2695_v13 = vor.u32 %v3036_v6, %v2694_v5 }
  0xba   : > { %1823 = vmatpush.bf16.msrb.mxu0 %v2551_v12  ;;  %v2599_v12 = vor.u32 %v3012_v4, %v2598_v20 }
  0xbb   : > { %1837 = vmatpush.bf16.msrb.mxu1 %v2647_v16  ;;  %v1565_v16 = vpop.f32.mrf.mxu1 }
  0xbc   : > { %1851 = vmatpush.bf16.msrb.mxu2 %v2743_v17  ;;  %v2791_v17 = vor.u32 %v3060_v29, %v2790_v15  ;;  %v1566_v18 = vadd.f32 %v1565_v16, %v1552_v11 }
  0xbd   : > { %1865 = vmatpush.bf16.msrb.mxu3 %v2839_v22  ;;  %v1579_v22 = vpop.f32.mrf.mxu2  ;;  %v1593_v24 = vpop.f32.mrf.mxu3 }
  0xbe   : > { %1824 = vmatpush.bf16.msrb.mxu0 %v2539_v28  ;;  %v1580_v23 = vadd.f32 %v1579_v22, %v1566_v18 }
  0xbf   : > { %1838 = vmatpush.bf16.msrb.mxu1 %v2635_v31 }
  0xc0   : > { %1852 = vmatpush.bf16.msrb.mxu2 %v2731_v32  ;;  %v1594_v25 = vadd.f32 %v1593_v24, %v1580_v23 }
  0xc1   : > { %1866 = vmatpush.bf16.msrb.mxu3 %v2827_v36 }
  0xc2   : > { %1825 = vmatpush.bf16.msrb.mxu0 %v2527_v46  ;;  %v471_v46 = vperm.slane %v4270_v19, 1 }
  0xc3   : > { %1839 = vmatpush.bf16.msrb.mxu1 %v2623_v50 }
  0xc4   : > { %1853 = vmatpush.bf16.msrb.mxu2 %v2719_v51 }
  0xc5   : > { %1867 = vmatpush.bf16.msrb.mxu3 %v2815_v55  ;;  %v472_v55 = vperm.slane %v4270_v19, 2 }
  0xc6   : > { %1826 = vmatpush.bf16.msrb.mxu0 %v2515_v62 }
  0xc7   : > { %1840 = vmatpush.bf16.msrb.mxu1 %v2611_v63 }
  0xc8   : > { %1854 = vmatpush.bf16.msrb.mxu2 %v2707_v0 }
  0xc9   : > { %1868 = vmatpush.bf16.msrb.mxu3 %v2803_v3 }
  0xca   : > { %1827 = vmatpush.bf16.msrb.mxu0 %v2503_v10  ;;  %v1605_v26 = vpop.f32.mrf.mxu0 }
  0xcb   : > { %1841 = vmatpush.bf16.msrb.mxu1 %v2599_v12  ;;  %v1619_v27 = vpop.f32.mrf.mxu1  ;;  %v1606_v3 = vadd.f32 %v1605_v26, %v1592_v14 }
  0xcc   : > { %1855 = vmatpush.bf16.msrb.mxu2 %v2695_v13 }
  0xcd   : > { %1869 = vmatpush.bf16.msrb.mxu3 %v2791_v17  ;;  %1828 = vmatmul.bf16.vlgmr.msrb.gmra.mxu0 %v3595_v39  ;;  %v1620_v29 = vadd.f32 %v1619_v27, %v1606_v3 }
  0xce   : > { %1842 = vmatmul.bf16.vlgmr.msrb.gmra.mxu1 %v3608_v44 }
  0xcf   : > { %1856 = vmatmul.bf16.vlgmr.msrb.gmra.mxu2 %v3606_v43 }
  0xd0   : > { %1870 = vmatmul.bf16.vlgmr.msrb.gmra.mxu3 %v3616_v47 }
  0xd2   : > { %v1633_v28 = vpop.f32.mrf.mxu2  ;;  %v1607_v31 = vpop.f32.mrf.mxu0 }
  0xd3   : > { %v1647_v30 = vpop.f32.mrf.mxu3  ;;  %v4364_v32 = vpop.f32.mrf.mxu1  ;;  %v1634_v16 = vadd.f32 %v1633_v28, %v1620_v29  ;;  %v1608_v22 = vadd.f32 %v1607_v31, %v1594_v25 }
  0xd5   : > { %v1648_v26 = vadd.f32 %v1647_v30, %v1634_v16 }
  0xda   : > { %v4366_v33 = vpop.f32.mrf.mxu2 }
  0xdb   : > { %v4368_v34 = vpop.f32.mrf.mxu3 }
  0xea   : > { %v1661_v39 = vpop.f32.mrf.mxu0 }
  0xeb   : > { %v1675_v35 = vpop.f32.mrf.mxu1  ;;  %v1662_v50 = vadd.f32 %v1661_v39, %v471_v46 }
  0xed   : > { %v1676_v52 = vadd.f32 %v1675_v35, %v1662_v50 }
  0xf2   : > { %v1689_v44 = vpop.f32.mrf.mxu2  ;;  %v1663_v43 = vpop.f32.mrf.mxu0 }
  0xf3   : > { %v1703_v36 = vpop.f32.mrf.mxu3  ;;  %v1677_v37 = vpop.f32.mrf.mxu1  ;;  %v1690_v57 = vadd.f32 %v1689_v44, %v1676_v52  ;;  %v1664_v58 = vadd.f32 %v1663_v43, %v471_v46  ;;  %v1622_v43 = vadd.f32 %v4364_v32, %v1608_v22  ;;  %v3106_v32 = vmov 384.0  }
  0xf4   : > { %3092 = vrcp.f32 %v3106_v32 }
  0xf5   : > { %v1704_v61 = vadd.f32 %v1703_v36, %v1690_v57  ;;  %v1678_v63 = vadd.f32 %v1677_v37, %v1664_v58  ;;  %v1636_v28 = vadd.f32 %v4366_v33, %v1622_v43 }
  0xf7   : > { %v1650_v30 = vadd.f32 %v4368_v34, %v1636_v28 }
  0xfa   : > { %v1691_v38 = vpop.f32.mrf.mxu2 }
  0xfb   : > { %v1705_v47 = vpop.f32.mrf.mxu3  ;;  %v1692_v4 = vadd.f32 %v1691_v38, %v1678_v63 }
  0xfd   : > { %v1706_v19 = vadd.f32 %v1705_v47, %v1692_v4 }
 0x10a   : > { %v1717_v40 = vpop.f32.mrf.mxu0 }
 0x10b   : > { %v1731_v41 = vpop.f32.mrf.mxu1  ;;  %v1718_v2 = vadd.f32 %v1717_v40, %v1704_v61 }
 0x10d   : > { %v1732_v7 = vadd.f32 %v1731_v41, %v1718_v2 }
 0x112   : > { %v1745_v42 = vpop.f32.mrf.mxu2  ;;  %v1719_v48 = vpop.f32.mrf.mxu0 }
 0x113   : > { %v1759_v45 = vpop.f32.mrf.mxu3  ;;  %v1733_v49 = vpop.f32.mrf.mxu1  ;;  %v1746_v11 = vadd.f32 %v1745_v42, %v1732_v7  ;;  %v1720_v17 = vadd.f32 %v1719_v48, %v1706_v19 }
 0x115   : > { %v1760_v23 = vadd.f32 %v1759_v45, %v1746_v11  ;;  %v1734_v39 = vadd.f32 %v1733_v49, %v1720_v17 }
 0x117   : > { %v1876_v40 = vadd.f32 %v1760_v23, %v1648_v26 }
 0x11a   : > { %v1747_v51 = vpop.f32.mrf.mxu2 }
 0x11b   : > { %v1761_v53 = vpop.f32.mrf.mxu3  ;;  %v1748_v37 = vadd.f32 %v1747_v51, %v1734_v39  ;;  %v3093_v51 = vpop.eup %3092 }
 0x11c   : > { %vm1889_vm0 = vweird.f32 %v3093_v51 }
 0x11d   : > { %v1762_v25 = vadd.f32 %v1761_v53, %v1748_v37 }
 0x11f   : > { %v1880_v49 = vadd.f32 %v1762_v25, %v1650_v30 }
 0x12a   : > { %v1773_v54 = vpop.f32.mrf.mxu0 }
 0x12b   : > { %v1787_v56 = vpop.f32.mrf.mxu1  ;;  %v1774_v59 = vadd.f32 %v1773_v54, %v472_v55  ;;  %v1885_v54 = vmul.f32 384.0, %v3093_v51 }
 0x12d   : > { %v1788_v0 = vadd.f32 %v1787_v56, %v1774_v59 }
 0x132   : > { %v1801_v60 = vpop.f32.mrf.mxu2  ;;  %v1775_v1 = vpop.f32.mrf.mxu0 }
 0x133   : > { %v1815_v62 = vpop.f32.mrf.mxu3  ;;  %v1789_v20 = vpop.f32.mrf.mxu1  ;;  %v1802_v5 = vadd.f32 %v1801_v60, %v1788_v0  ;;  %v1776_v6 = vadd.f32 %v1775_v1, %v472_v55  ;;  %v1886_v55 = vsub.f32 1.0, %v1885_v54 }
 0x135   : > { %v1816_v21 = vadd.f32 %v1815_v62, %v1802_v5  ;;  %v1790_v8 = vadd.f32 %v1789_v20, %v1776_v6  ;;  %v1887_v33 = vmul.f32 %v3093_v51, %v1886_v55 }
 0x137   : > { %v1888_v56 = vadd.f32 %v3093_v51, %v1887_v33 }
 0x139   : > { %v1890_v53 = vsel %vm1889_vm0, %v3093_v51, %v1888_v56 }
 0x13a   : > { %v1803_v15 = vpop.f32.mrf.mxu2 }
 0x13b   : > { %v1817_v9 = vpop.f32.mrf.mxu3  ;;  %v1804_v18 = vadd.f32 %v1803_v15, %v1790_v8 }
 0x13d   : > { %v1818_v35 = vadd.f32 %v1817_v9, %v1804_v18 }
 0x14a   : > { %v1829_v10 = vpop.f32.mrf.mxu0 }
 0x14b   : > { %v1830_v12 = vadd.f32 %v1829_v10, %v1816_v21  ;;  %v1843_v13 = vpop.f32.mrf.mxu1 }
 0x14d   : > { %v1844_v14 = vadd.f32 %v1843_v13, %v1830_v12 }
 0x152   : > { %v1857_v24 = vpop.f32.mrf.mxu2  ;;  %v1831_v36 = vpop.f32.mrf.mxu0 }
 0x153   : > { %v1858_v44 = vadd.f32 %v1857_v24, %v1844_v14  ;;  %v1871_v27 = vpop.f32.mrf.mxu3  ;;  %v1832_v47 = vadd.f32 %v1831_v36, %v1818_v35  ;;  %v1845_v42 = vpop.f32.mrf.mxu1  ;;  %v2877_v24 = vld [vmem:[%s4406_s2 + $0x2] ss:$4 sm:$0x7] }
 0x154   : > { %v1961_v37 = vperm.slane %v2877_v24, 0 }
 0x155   : > { %v1872_v38 = vadd.f32 %v1871_v27, %v1858_v44  ;;  %v1846_v31 = vadd.f32 %v1845_v42, %v1832_v47  ;;  %v2878_v42 = vld [vmem:[%s4406_s2 + $0x3] ss:$4 sm:$0x7] }
 0x156   : > { %v1983_v32 = vperm.slane %v2878_v42, 1  ;;  %v1984_v56 = vperm.slane %v2878_v42, 2 }
 0x157   : > { %v1877_v41 = vadd.f32 %v1876_v40, %v1872_v38 }
 0x159   : > { %1878 = vadd.xlane.f32.xlu0 %v1877_v41  ;;  %v1963_v41 = vperm.slane %v2877_v24, 2 }
 0x15a   : > { %v1859_v45 = vpop.f32.mrf.mxu2 }
 0x15b   : > { %v1860_v46 = vadd.f32 %v1859_v45, %v1846_v31  ;;  %v1873_v48 = vpop.f32.mrf.mxu3 }
 0x15d   : > { %v1874_v50 = vadd.f32 %v1873_v48, %v1860_v46  ;;  %v1982_v48 = vperm.slane %v2878_v42, 0 }
 0x15f   : > { %v1881_v52 = vadd.f32 %v1880_v49, %v1874_v50 }
 0x161   : > { %1882 = vadd.xlane.f32.xlu0 %v1881_v52 }
 0x1cc   : > { %v1879_v57 = vpop.xlane.xlu0 %1878 }
 0x1cd   : > { %v1891_v58 = vmul.f32 %v1890_v53, %v1879_v57 }
 0x1cf   : > { %v1893_v59 = vsub.f32 %v1648_v26, %v1891_v58  ;;  %v1894_v60 = vsub.f32 %v1760_v23, %v1891_v58  ;;  %v1895_v34 = vsub.f32 %v1872_v38, %v1891_v58  ;;  %v2876_v23 = vld [vmem:[%s4406_s2 + $0x1] ss:$4 sm:$0x7]  ;;  %v1962_v38 = vperm.slane %v2877_v24, 1 }
 0x1d0   : > { %v1946_v35 = vperm.slane %v2876_v23, 0  ;;  %v1947_v44 = vperm.slane %v2876_v23, 1  ;;  %v1948_v27 = vperm.slane %v2876_v23, 2 }
 0x1d1   : > { %v1899_v61 = vmul.f32 %v1893_v59, %v1893_v59  ;;  %v1900_v62 = vmul.f32 %v1894_v60, %v1894_v60  ;;  %v1901_v63 = vmul.f32 %v1895_v34, %v1895_v34 }
 0x1d3   : > { %v1905_v0 = vadd.f32 %v1900_v62, %v1899_v61 }
 0x1d4   : > { %v1883_v1 = vpop.xlane.xlu0 %1882 }
 0x1d5   : > { %v1892_v2 = vmul.f32 %v1890_v53, %v1883_v1  ;;  %v1906_v20 = vadd.f32 %v1905_v0, %v1901_v63 }
 0x1d7   : > { %v4375_v3 = vsub.f32 %v1650_v30, %v1892_v2  ;;  %v1897_v4 = vsub.f32 %v1762_v25, %v1892_v2  ;;  %v4377_v5 = vsub.f32 %v1874_v50, %v1892_v2  ;;  %1907 = vadd.xlane.f32.xlu1 %v1906_v20 }
 0x1d9   : > { %v1902_v6 = vmul.f32 %v4375_v3, %v4375_v3  ;;  %v1903_v7 = vmul.f32 %v1897_v4, %v1897_v4  ;;  %v1904_v15 = vmul.f32 %v4377_v5, %v4377_v5 }
 0x1db   : > { %v1909_v29 = vadd.f32 %v1903_v7, %v1902_v6 }
 0x1dd   : > { %v1910_v19 = vadd.f32 %v1909_v29, %v1904_v15 }
 0x1df   : > { %1911 = vadd.xlane.f32.xlu1 %v1910_v19 }
 0x24a   : > { %v1908_v21 = vpop.xlane.xlu1 %1907 }
 0x24b   : > { %v1913_v8 = vmul.f32 %v1908_v21, %v1890_v53 }
 0x24d   : > { %v1915_v9 = vadd.f32 1e-05, %v1913_v8 }
 0x24f   : > { %3094 = vrsqrt.f32 %v1915_v9  ;;  %vm1923_vm2 = vweird.f32 %v1915_v9 }
 0x252   : > { %v1912_v10 = vpop.xlane.xlu1 %1911 }
 0x253   : > { %v1914_v11 = vmul.f32 %v1912_v10, %v1890_v53 }
 0x255   : > { %v3095_v12 = vpop.eup %3094  ;;  %v1916_v13 = vadd.f32 1e-05, %v1914_v11 }
 0x256   : > { %v1918_v16 = vmul.f32 %v3095_v12, %v1915_v9  ;;  %vm1924_vm1 = vweird.f32 %v3095_v12 }
 0x257   : > { %3096 = vrsqrt.f32 %v1916_v13  ;;  %vm1925_vm3 = vmor %vm1923_vm2, %vm1924_vm1  ;;  %vm1933_vm5 = vweird.f32 %v1916_v13 }
 0x258   : > { %v1919_v17 = vmul.f32 %v3095_v12, %v1918_v16 }
 0x25a   : > { %v1920_v18 = vmul.f32 0.5, %v1919_v17 }
 0x25c   : > { %v1921_v22 = vsub.f32 1.5, %v1920_v18 }
 0x25d   : > { %v3097_v14 = vpop.eup %3096 }
 0x25e   : > { %v1922_v26 = vmul.f32 %v3095_v12, %v1921_v22  ;;  %v1928_v39 = vmul.f32 %v3097_v14, %v1916_v13  ;;  %vm1934_vm4 = vweird.f32 %v3097_v14 }
 0x25f   : > { %vm1935_vm6 = vmor %vm1933_vm5, %vm1934_vm4 }
 0x260   : > { %v1926_v36 = vsel %vm1925_vm3, %v3095_v12, %v1922_v26  ;;  %v1929_v43 = vmul.f32 %v3097_v14, %v1928_v39 }
 0x261   : > { %v1937_v47 = vmul.f32 %v1926_v36, %v1893_v59  ;;  %v1938_v40 = vmul.f32 %v1926_v36, %v1894_v60  ;;  %v1939_v28 = vmul.f32 %v1926_v36, %v1895_v34 }
 0x262   : > { %v1930_v25 = vmul.f32 0.5, %v1929_v43 }
 0x263   : > { %v1952_v31 = vmul.f32 %v1946_v35, %v1937_v47  ;;  %v1953_v45 = vmul.f32 %v1947_v44, %v1938_v40  ;;  %v1954_v30 = vmul.f32 %v1948_v27, %v1939_v28 }
 0x264   : > { %v1931_v46 = vsub.f32 1.5, %v1930_v25 }
 0x265   : > { %v1967_v49 = vadd.f32 %v1961_v37, %v1952_v31  ;;  %v1968_v50 = vadd.f32 %v1962_v38, %v1953_v45  ;;  %v1969_v52 = vadd.f32 %v1963_v41, %v1954_v30 }
 0x266   : > { %v1932_v51 = vmul.f32 %v3097_v14, %v1931_v46 }
 0x267   : > { %v1973_v54 = vmax.f32 %v1967_v49, 0.0  ;;  %v1974_v55 = vmax.f32 %v1968_v50, 0.0  ;;  %v1975_v33 = vmax.f32 %v1969_v52, 0.0 }
 0x268   : > { %v1936_v53 = vsel %vm1935_vm6, %v3097_v14, %v1932_v51 }
 0x269   : > { %v1940_v57 = vmul.f32 %v1936_v53, %v4375_v3  ;;  %v1941_v58 = vmul.f32 %v1936_v53, %v1897_v4  ;;  %v1988_v59 = vmul.f32 %v1982_v48, %v1973_v54  ;;  %v1989_v60 = vmul.f32 %v1983_v32, %v1974_v55 }
 0x26a   : > { %v1942_v34 = vmul.f32 %v1936_v53, %v4377_v5  ;;  %v1990_v61 = vmul.f32 %v1984_v56, %v1975_v33  ;;  %v3091_v5 = vld [vmem:[%s4407_s3] ss:$0 sm:$0xff] }
 0x26b   : > { %v1994_v62 = vadd.f32 %v1989_v60, %v1988_v59  ;;  %v1955_v63 = vmul.f32 %v1946_v35, %v1940_v57  ;;  %v1956_v0 = vmul.f32 %v1947_v44, %v1941_v58 }
 0x26c   : > { %v1957_v1 = vmul.f32 %v1948_v27, %v1942_v34 }
 0x26d   : > { %v1995_v2 = vadd.f32 %v1994_v62, %v1990_v61  ;;  %v1970_v20 = vadd.f32 %v1961_v37, %v1955_v63  ;;  %v1971_v6 = vadd.f32 %v1962_v38, %v1956_v0 }
 0x26e   : > { %v1972_v7 = vadd.f32 %v1963_v41, %v1957_v1 }
 0x26f   : > { %1996 = vadd.xlane.f32.xlu2 %v1995_v2  ;;  %v1976_v15 = vmax.f32 %v1970_v20, 0.0  ;;  %v1977_v29 = vmax.f32 %v1971_v6, 0.0 }
 0x270   : > { %v1978_v19 = vmax.f32 %v1972_v7, 0.0 }
 0x271   : > { %v1991_v3 = vmul.f32 %v1982_v48, %v1976_v15  ;;  %v1992_v4 = vmul.f32 %v1983_v32, %v1977_v29 }
 0x272   : > { %v1993_v21 = vmul.f32 %v1984_v56, %v1978_v19 }
 0x273   : > { %v1998_v8 = vadd.f32 %v1992_v4, %v1991_v3 }
 0x275   : > { %v1999_v9 = vadd.f32 %v1998_v8, %v1993_v21 }
 0x277   : > { %2000 = vadd.xlane.f32.xlu2 %v1999_v9 }
 0x2e2   : > { %v1997_v10 = vpop.xlane.xlu2 %1996 }
 0x2e3   : > { %v2006_v11 = vadd.f32 %v3091_v5, %v1997_v10 }
 0x2e5   : > { %2008 = vst [vmem:[%s202_s12] sm:$0xff] %v2006_v11 }
 0x2ea   : > { %v2001_v12 = vpop.xlane.xlu2 %2000 }
 0x2eb   : > { %v2007_v13 = vadd.f32 %v3091_v5, %v2001_v12 }
 0x2ed   : > { %2009 = vst [vmem:[%s202_s12 + $0x8] sm:$0xff] %v2007_v13 }
 0x2ee PF: > { %s14_s15 = sadd.s32 1, %s3104_s15  }
 0x2ef   : > { %p11_p4 = scmp.ge.s32.totalorder %s14_s15, 4  }
 0x2f1   :  { %13 = sbr.rel (!%p11_p4) target bundleno = 1 (0x1), region = 69 }

</bundles_post_ra>
